<compile_context>
chip_gen: v7x
topology: tpu7x:2x2x1
jax: 0.10.0
libtpu: 0.0.40
codegen_flags: <defaults>
</compile_context>

<pallas_src>
import functools

import jax
import jax.numpy as jnp
from jax import lax
from jax.experimental import pallas as pl
from jax.experimental.pallas import tpu as pltpu


def _paconv_kernel(x_ref, w2_ref, b2_ref, w3_ref, w4_ref, mask_ref, o_ref,
                   *, H, W):
    # x_ref   : (BB, C, P)  flattened NCHW block, P = H*W (lane-dense)
    # w2_ref  : (C, C)      k2 1x1 weight          [co, ci]
    # b2_ref  : (C, 1)      k2 bias
    # w3_ref  : (9, C, C)   fused depthwise*pointwise weight per tap [t, co, ci]
    # w4_ref  : (9, C, C)   k4 3x3 weight per tap  [t, co, ci]
    # mask_ref: (9, P)      0/1 halo masks (zero where the 3x3 window is OOB)
    # o_ref   : (BB, C, P)
    BB, C, P = x_ref.shape

    w2 = w2_ref[...]
    b2 = b2_ref[...]

    def tap_shift(a, t):
        # a: (C, P).  Column p of the result holds a[:, p + d] for the tap
        # offset d = (kh-1)*W + (kw-1); positions whose 3x3 window falls
        # outside the image are zeroed (this replaces padded-scratch staging).
        d = (t // 3 - 1) * W + (t % 3 - 1)
        s = (-d) % P
        rolled = pltpu.roll(a, s, axis=1) if s else a
        return rolled * mask_ref[t:t + 1, :]

    for n in range(BB):                    # static unroll; batch is tiny
        x = x_ref[n]                       # (C, P)

        # ---- k2: 1x1 conv + bias + sigmoid (no spatial taps) ----------------
        y = jax.nn.sigmoid(
            jnp.dot(w2, x, preferred_element_type=jnp.float32) + b2)

        # ---- k3: depthwise 3x3 fused with pointwise 1x1 ---------------------
        # 9 accumulating (C,C)@(C,P) dots; accumulator stays in vregs.
        k3 = jnp.zeros((C, P), jnp.float32)
        for t in range(9):
            k3 = k3 + jnp.dot(w3_ref[t], tap_shift(x, t),
                              preferred_element_type=jnp.float32)

        tprod = k3 * y                     # attention product, (C, P)

        # ---- k4: plain 3x3 conv ---------------------------------------------
        out = jnp.zeros((C, P), jnp.float32)
        for t in range(9):
            out = out + jnp.dot(w4_ref[t], tap_shift(tprod, t),
                                preferred_element_type=jnp.float32)

        o_ref[n] = out.astype(o_ref.dtype)     # lane-dense (C, P) store


def paconv_pallas(x_nchw, k2_w, k2_b, dw_w, pw_w, k4_w, *, batch_block=None):
    """x_nchw: (N, C, H, W).  Weights in PyTorch layouts:
       k2_w (C,C,1,1), k2_b (C,), dw_w (C,1,3,3), pw_w (C,C,1,1), k4_w (C,C,3,3).
       Assumes H*W is a lane-friendly size (multiple of 128 here) and C % 8 == 0.
    """
    N, C, H, W = x_nchw.shape
    P = H * W
    if batch_block is None:
        batch_block = N          # fold whole batch into one step (v5e / v6e)
    assert N % batch_block == 0
    # TODO(synk): on v7x use batch_block = max(1, N // 2) so both TensorCores
    # get work, and for large H*W*C add an H row-block grid axis (halo masks
    # generalize directly) with VMEM budget re-derived against 64 MiB.

    # Free reshape: no wrapper-side transpose or padding at all.
    x2 = x_nchw.reshape(N, C, P).astype(jnp.float32)

    # --- trace-time weight re-layout / fusion (free) --------------------------
    w2 = k2_w[:, :, 0, 0].astype(jnp.float32)                      # (co, ci)
    b2 = k2_b.reshape(C, 1).astype(jnp.float32)
    dw_t = jnp.transpose(dw_w[:, 0].reshape(C, 9), (1, 0))         # (tap, ci)
    pw_m = pw_w[:, :, 0, 0]                                        # (co, ci)
    w3 = (pw_m[None, :, :] * dw_t[:, None, :]).astype(jnp.float32)  # (9, co, ci)
    w4 = jnp.transpose(k4_w.reshape(C, C, 9), (2, 0, 1)).astype(jnp.float32)

    # Halo masks per tap: valid(p) <=> the shifted source pixel is inside the
    # image (implements SAME zero padding without any padded scratch).
    pcol = jnp.arange(P)
    hh, ww = pcol // W, pcol % W
    masks = []
    for kh in range(3):
        for kw in range(3):
            dh, dw_ = kh - 1, kw - 1
            ok = ((hh + dh >= 0) & (hh + dh < H) &
                  (ww + dw_ >= 0) & (ww + dw_ < W))
            masks.append(ok)
    mask = jnp.stack(masks).astype(jnp.float32)                    # (9, P)

    kernel = functools.partial(_paconv_kernel, H=H, W=W)
    grid = (N // batch_block,)

    out = pl.pallas_call(
        kernel,
        out_shape=jax.ShapeDtypeStruct((N, C, P), jnp.float32),
        grid=grid,
        in_specs=[
            pl.BlockSpec((batch_block, C, P), lambda i: (i, 0, 0)),
            pl.BlockSpec((C, C), lambda i: (0, 0)),
            pl.BlockSpec((C, 1), lambda i: (0, 0)),
            pl.BlockSpec((9, C, C), lambda i: (0, 0, 0)),
            pl.BlockSpec((9, C, C), lambda i: (0, 0, 0)),
            pl.BlockSpec((9, P), lambda i: (0, 0)),
        ],
        out_specs=pl.BlockSpec((batch_block, C, P), lambda i: (i, 0, 0)),
        compiler_params=pltpu.CompilerParams(
            dimension_semantics=("parallel",)),
    )(x2, w2, b2, w3, w4, mask)

    return out.reshape(N, C, H, W)         # free reshape back to NCHW


def paconv_reference(x_nchw, k2_w, k2_b, dw_w, pw_w, k4_w):
    """Pure-JAX reference using lax.conv_general_dilated (NHWC / HWIO)."""
    C = x_nchw.shape[1]
    x = jnp.transpose(x_nchw, (0, 2, 3, 1)).astype(jnp.float32)    # NHWC
    dn = ("NHWC", "HWIO", "NHWC")

    k2_hwio = jnp.transpose(k2_w, (2, 3, 1, 0))                    # (1,1,Ci,Co)
    dw_hwio = jnp.transpose(dw_w, (2, 3, 1, 0))                    # (3,3,1,C)
    pw_hwio = jnp.transpose(pw_w, (2, 3, 1, 0))                    # (1,1,Ci,Co)
    k4_hwio = jnp.transpose(k4_w, (2, 3, 1, 0))                    # (3,3,Ci,Co)

    y = lax.conv_general_dilated(x, k2_hwio, (1, 1), "SAME",
                                 dimension_numbers=dn) + k2_b
    y = jax.nn.sigmoid(y)
    d = lax.conv_general_dilated(x, dw_hwio, (1, 1), "SAME",
                                 dimension_numbers=dn, feature_group_count=C)
    k3 = lax.conv_general_dilated(d, pw_hwio, (1, 1), "SAME",
                                  dimension_numbers=dn)
    t = k3 * y
    out = lax.conv_general_dilated(t, k4_hwio, (1, 1), "SAME",
                                   dimension_numbers=dn)
    return jnp.transpose(out, (0, 3, 1, 2))


if __name__ == "__main__":
    key = jax.random.PRNGKey(0)
    N, C, H, W = 2, 16, 16, 16

    ks = jax.random.split(key, 6)
    x = jax.random.normal(ks[0], (N, C, H, W), jnp.float32)
    # Deterministic synthetic parameters (PyTorch layouts), kaiming-ish scaled.
    k2_w = jax.random.normal(ks[1], (C, C, 1, 1), jnp.float32) * (1.0 / C) ** 0.5
    k2_b = jax.random.normal(ks[2], (C,), jnp.float32) * 0.1
    dw_w = jax.random.normal(ks[3], (C, 1, 3, 3), jnp.float32) * (1.0 / 9) ** 0.5
    pw_w = jax.random.normal(ks[4], (C, C, 1, 1), jnp.float32) * (1.0 / C) ** 0.5
    k4_w = jax.random.normal(ks[5], (C, C, 3, 3), jnp.float32) * (1.0 / (9 * C)) ** 0.5

    out = paconv_pallas(x, k2_w, k2_b, dw_w, pw_w, k4_w)
    jax.block_until_ready(out)

    ref = paconv_reference(x, k2_w, k2_b, dw_w, pw_w, k4_w)
    assert out.shape == (N, C, H, W)
    assert jnp.allclose(out, ref, rtol=1e-3, atol=1e-3), "mismatch vs reference"

    print("KERNEL_OK")
</pallas_src>

<mosaic_0001>
module attributes {stable_mosaic.version = 11 : i64} {
  func.func @_paconv_kernel(%arg0: i32, %arg1: memref<2x16x256xf32, #tpu.memory_space<vmem>>, %arg2: memref<16x16xf32, #tpu.memory_space<vmem>>, %arg3: memref<16x1xf32, #tpu.memory_space<vmem>>, %arg4: memref<9x16x16xf32, #tpu.memory_space<vmem>>, %arg5: memref<9x16x16xf32, #tpu.memory_space<vmem>>, %arg6: memref<9x256xf32, #tpu.memory_space<vmem>>, %arg7: memref<2x16x256xf32, #tpu.memory_space<vmem>>) attributes {dimension_semantics = [#tpu.dimension_semantics<parallel>], iteration_bounds = array<i64: 1>, scalar_prefetch = 0 : i64, scratch_operands = 0 : i64, tpu.core_type = #tpu.core_type<tc>, window_params = [{transform_indices = @transform_0, window_bounds = array<i64: 2, 16, 256>}, {pipeline_mode = #tpu.pipeline_mode<synchronous>, transform_indices = @transform_1, window_bounds = array<i64: 16, 16>}, {pipeline_mode = #tpu.pipeline_mode<synchronous>, transform_indices = @transform_2, window_bounds = array<i64: 16, 1>}, {pipeline_mode = #tpu.pipeline_mode<synchronous>, transform_indices = @transform_3, window_bounds = array<i64: 9, 16, 16>}, {pipeline_mode = #tpu.pipeline_mode<synchronous>, transform_indices = @transform_4, window_bounds = array<i64: 9, 16, 16>}, {pipeline_mode = #tpu.pipeline_mode<synchronous>, transform_indices = @transform_5, window_bounds = array<i64: 9, 256>}, {transform_indices = @transform_6, window_bounds = array<i64: 2, 16, 256>}]} {
    %c0 = arith.constant 0 : index
    %c0_0 = arith.constant 0 : index
    %0 = vector.load %arg2[%c0, %c0_0] : memref<16x16xf32, #tpu.memory_space<vmem>>, vector<16x16xf32>
    %c0_1 = arith.constant 0 : index
    %c0_2 = arith.constant 0 : index
    %1 = vector.load %arg3[%c0_1, %c0_2] : memref<16x1xf32, #tpu.memory_space<vmem>>, vector<16x1xf32>
    %c0_3 = arith.constant 0 : index
    %c0_4 = arith.constant 0 : index
    %c0_5 = arith.constant 0 : index
    %2 = vector.load %arg1[%c0_3, %c0_4, %c0_5] : memref<2x16x256xf32, #tpu.memory_space<vmem>>, vector<1x16x256xf32>
    %3 = vector.shape_cast %2 : vector<1x16x256xf32> to vector<16x256xf32>
    %cst = arith.constant dense<0.000000e+00> : vector<16x256xf32>
    %4 = tpu.matmul %0, %3, %cst {dimension_numbers = #tpu.dot_dimension_numbers<[1], [0], [0], [1], [0, 0, 1, 1], [], []>} : vector<16x16xf32>, vector<16x256xf32>, vector<16x256xf32> -> vector<16x256xf32>
    %5 = vector.broadcast %1 : vector<16x1xf32> to vector<16x256xf32>
    %6 = arith.addf %4, %5 : vector<16x256xf32>
    %7 = arith.negf %6 : vector<16x256xf32>
    %8 = math.exp %7 : vector<16x256xf32>
    %cst_6 = arith.constant 1.000000e+00 : f32
    %9 = vector.broadcast %cst_6 : f32 to vector<16x256xf32>
    %10 = arith.addf %9, %8 : vector<16x256xf32>
    %11 = arith.divf %9, %10 : vector<16x256xf32>
    %cst_7 = arith.constant 0.000000e+00 : f32
    %12 = vector.broadcast %cst_7 : f32 to vector<16x256xf32>
    %c0_8 = arith.constant 0 : index
    %c0_9 = arith.constant 0 : index
    %c0_10 = arith.constant 0 : index
    %13 = vector.load %arg4[%c0_8, %c0_9, %c0_10] : memref<9x16x16xf32, #tpu.memory_space<vmem>>, vector<1x16x16xf32>
    %14 = vector.shape_cast %13 : vector<1x16x16xf32> to vector<16x16xf32>
    %c17_i32 = arith.constant 17 : i32
    %15 = tpu.dynamic_rotate %3 by %c17_i32 dim 1 : vector<16x256xf32>, i32 -> vector<16x256xf32>
    %c0_11 = arith.constant 0 : index
    %c0_12 = arith.constant 0 : index
    %16 = vector.load %arg6[%c0_11, %c0_12] : memref<9x256xf32, #tpu.memory_space<vmem>>, vector<1x256xf32>
    %17 = vector.broadcast %16 : vector<1x256xf32> to vector<16x256xf32>
    %18 = arith.mulf %15, %17 : vector<16x256xf32>
    %cst_13 = arith.constant dense<0.000000e+00> : vector<16x256xf32>
    %19 = tpu.matmul %14, %18, %cst_13 {dimension_numbers = #tpu.dot_dimension_numbers<[1], [0], [0], [1], [0, 0, 1, 1], [], []>} : vector<16x16xf32>, vector<16x256xf32>, vector<16x256xf32> -> vector<16x256xf32>
    %20 = arith.addf %12, %19 : vector<16x256xf32>
    %c1 = arith.constant 1 : index
    %c0_14 = arith.constant 0 : index
    %c0_15 = arith.constant 0 : index
    %21 = vector.load %arg4[%c1, %c0_14, %c0_15] : memref<9x16x16xf32, #tpu.memory_space<vmem>>, vector<1x16x16xf32>
    %22 = vector.shape_cast %21 : vector<1x16x16xf32> to vector<16x16xf32>
    %c16_i32 = arith.constant 16 : i32
    %23 = tpu.dynamic_rotate %3 by %c16_i32 dim 1 : vector<16x256xf32>, i32 -> vector<16x256xf32>
    %c1_16 = arith.constant 1 : index
    %c0_17 = arith.constant 0 : index
    %24 = vector.load %arg6[%c1_16, %c0_17] : memref<9x256xf32, #tpu.memory_space<vmem>>, vector<1x256xf32>
    %25 = vector.broadcast %24 : vector<1x256xf32> to vector<16x256xf32>
    %26 = arith.mulf %23, %25 : vector<16x256xf32>
    %cst_18 = arith.constant dense<0.000000e+00> : vector<16x256xf32>
    %27 = tpu.matmul %22, %26, %cst_18 {dimension_numbers = #tpu.dot_dimension_numbers<[1], [0], [0], [1], [0, 0, 1, 1], [], []>} : vector<16x16xf32>, vector<16x256xf32>, vector<16x256xf32> -> vector<16x256xf32>
    %28 = arith.addf %20, %27 : vector<16x256xf32>
    %c2 = arith.constant 2 : index
    %c0_19 = arith.constant 0 : index
    %c0_20 = arith.constant 0 : index
    %29 = vector.load %arg4[%c2, %c0_19, %c0_20] : memref<9x16x16xf32, #tpu.memory_space<vmem>>, vector<1x16x16xf32>
    %30 = vector.shape_cast %29 : vector<1x16x16xf32> to vector<16x16xf32>
    %c15_i32 = arith.constant 15 : i32
    %31 = tpu.dynamic_rotate %3 by %c15_i32 dim 1 : vector<16x256xf32>, i32 -> vector<16x256xf32>
    %c2_21 = arith.constant 2 : index
    %c0_22 = arith.constant 0 : index
    %32 = vector.load %arg6[%c2_21, %c0_22] : memref<9x256xf32, #tpu.memory_space<vmem>>, vector<1x256xf32>
    %33 = vector.broadcast %32 : vector<1x256xf32> to vector<16x256xf32>
    %34 = arith.mulf %31, %33 : vector<16x256xf32>
    %cst_23 = arith.constant dense<0.000000e+00> : vector<16x256xf32>
    %35 = tpu.matmul %30, %34, %cst_23 {dimension_numbers = #tpu.dot_dimension_numbers<[1], [0], [0], [1], [0, 0, 1, 1], [], []>} : vector<16x16xf32>, vector<16x256xf32>, vector<16x256xf32> -> vector<16x256xf32>
    %36 = arith.addf %28, %35 : vector<16x256xf32>
    %c3 = arith.constant 3 : index
    %c0_24 = arith.constant 0 : index
    %c0_25 = arith.constant 0 : index
    %37 = vector.load %arg4[%c3, %c0_24, %c0_25] : memref<9x16x16xf32, #tpu.memory_space<vmem>>, vector<1x16x16xf32>
    %38 = vector.shape_cast %37 : vector<1x16x16xf32> to vector<16x16xf32>
    %c1_i32 = arith.constant 1 : i32
    %39 = tpu.dynamic_rotate %3 by %c1_i32 dim 1 : vector<16x256xf32>, i32 -> vector<16x256xf32>
    %c3_26 = arith.constant 3 : index
    %c0_27 = arith.constant 0 : index
    %40 = vector.load %arg6[%c3_26, %c0_27] : memref<9x256xf32, #tpu.memory_space<vmem>>, vector<1x256xf32>
    %41 = vector.broadcast %40 : vector<1x256xf32> to vector<16x256xf32>
    %42 = arith.mulf %39, %41 : vector<16x256xf32>
    %cst_28 = arith.constant dense<0.000000e+00> : vector<16x256xf32>
    %43 = tpu.matmul %38, %42, %cst_28 {dimension_numbers = #tpu.dot_dimension_numbers<[1], [0], [0], [1], [0, 0, 1, 1], [], []>} : vector<16x16xf32>, vector<16x256xf32>, vector<16x256xf32> -> vector<16x256xf32>
    %44 = arith.addf %36, %43 : vector<16x256xf32>
    %c4 = arith.constant 4 : index
    %c0_29 = arith.constant 0 : index
    %c0_30 = arith.constant 0 : index
    %45 = vector.load %arg4[%c4, %c0_29, %c0_30] : memref<9x16x16xf32, #tpu.memory_space<vmem>>, vector<1x16x16xf32>
    %46 = vector.shape_cast %45 : vector<1x16x16xf32> to vector<16x16xf32>
    %c4_31 = arith.constant 4 : index
    %c0_32 = arith.constant 0 : index
    %47 = vector.load %arg6[%c4_31, %c0_32] : memref<9x256xf32, #tpu.memory_space<vmem>>, vector<1x256xf32>
    %48 = vector.broadcast %47 : vector<1x256xf32> to vector<16x256xf32>
    %49 = arith.mulf %3, %48 : vector<16x256xf32>
    %cst_33 = arith.constant dense<0.000000e+00> : vector<16x256xf32>
    %50 = tpu.matmul %46, %49, %cst_33 {dimension_numbers = #tpu.dot_dimension_numbers<[1], [0], [0], [1], [0, 0, 1, 1], [], []>} : vector<16x16xf32>, vector<16x256xf32>, vector<16x256xf32> -> vector<16x256xf32>
    %51 = arith.addf %44, %50 : vector<16x256xf32>
    %c5 = arith.constant 5 : index
    %c0_34 = arith.constant 0 : index
    %c0_35 = arith.constant 0 : index
    %52 = vector.load %arg4[%c5, %c0_34, %c0_35] : memref<9x16x16xf32, #tpu.memory_space<vmem>>, vector<1x16x16xf32>
    %53 = vector.shape_cast %52 : vector<1x16x16xf32> to vector<16x16xf32>
    %c255_i32 = arith.constant 255 : i32
    %54 = tpu.dynamic_rotate %3 by %c255_i32 dim 1 : vector<16x256xf32>, i32 -> vector<16x256xf32>
    %c5_36 = arith.constant 5 : index
    %c0_37 = arith.constant 0 : index
    %55 = vector.load %arg6[%c5_36, %c0_37] : memref<9x256xf32, #tpu.memory_space<vmem>>, vector<1x256xf32>
    %56 = vector.broadcast %55 : vector<1x256xf32> to vector<16x256xf32>
    %57 = arith.mulf %54, %56 : vector<16x256xf32>
    %cst_38 = arith.constant dense<0.000000e+00> : vector<16x256xf32>
    %58 = tpu.matmul %53, %57, %cst_38 {dimension_numbers = #tpu.dot_dimension_numbers<[1], [0], [0], [1], [0, 0, 1, 1], [], []>} : vector<16x16xf32>, vector<16x256xf32>, vector<16x256xf32> -> vector<16x256xf32>
    %59 = arith.addf %51, %58 : vector<16x256xf32>
    %c6 = arith.constant 6 : index
    %c0_39 = arith.constant 0 : index
    %c0_40 = arith.constant 0 : index
    %60 = vector.load %arg4[%c6, %c0_39, %c0_40] : memref<9x16x16xf32, #tpu.memory_space<vmem>>, vector<1x16x16xf32>
    %61 = vector.shape_cast %60 : vector<1x16x16xf32> to vector<16x16xf32>
    %c241_i32 = arith.constant 241 : i32
    %62 = tpu.dynamic_rotate %3 by %c241_i32 dim 1 : vector<16x256xf32>, i32 -> vector<16x256xf32>
    %c6_41 = arith.constant 6 : index
    %c0_42 = arith.constant 0 : index
    %63 = vector.load %arg6[%c6_41, %c0_42] : memref<9x256xf32, #tpu.memory_space<vmem>>, vector<1x256xf32>
    %64 = vector.broadcast %63 : vector<1x256xf32> to vector<16x256xf32>
    %65 = arith.mulf %62, %64 : vector<16x256xf32>
    %cst_43 = arith.constant dense<0.000000e+00> : vector<16x256xf32>
    %66 = tpu.matmul %61, %65, %cst_43 {dimension_numbers = #tpu.dot_dimension_numbers<[1], [0], [0], [1], [0, 0, 1, 1], [], []>} : vector<16x16xf32>, vector<16x256xf32>, vector<16x256xf32> -> vector<16x256xf32>
    %67 = arith.addf %59, %66 : vector<16x256xf32>
    %c7 = arith.constant 7 : index
    %c0_44 = arith.constant 0 : index
    %c0_45 = arith.constant 0 : index
    %68 = vector.load %arg4[%c7, %c0_44, %c0_45] : memref<9x16x16xf32, #tpu.memory_space<vmem>>, vector<1x16x16xf32>
    %69 = vector.shape_cast %68 : vector<1x16x16xf32> to vector<16x16xf32>
    %c240_i32 = arith.constant 240 : i32
    %70 = tpu.dynamic_rotate %3 by %c240_i32 dim 1 : vector<16x256xf32>, i32 -> vector<16x256xf32>
    %c7_46 = arith.constant 7 : index
    %c0_47 = arith.constant 0 : index
    %71 = vector.load %arg6[%c7_46, %c0_47] : memref<9x256xf32, #tpu.memory_space<vmem>>, vector<1x256xf32>
    %72 = vector.broadcast %71 : vector<1x256xf32> to vector<16x256xf32>
    %73 = arith.mulf %70, %72 : vector<16x256xf32>
    %cst_48 = arith.constant dense<0.000000e+00> : vector<16x256xf32>
    %74 = tpu.matmul %69, %73, %cst_48 {dimension_numbers = #tpu.dot_dimension_numbers<[1], [0], [0], [1], [0, 0, 1, 1], [], []>} : vector<16x16xf32>, vector<16x256xf32>, vector<16x256xf32> -> vector<16x256xf32>
    %75 = arith.addf %67, %74 : vector<16x256xf32>
    %c8 = arith.constant 8 : index
    %c0_49 = arith.constant 0 : index
    %c0_50 = arith.constant 0 : index
    %76 = vector.load %arg4[%c8, %c0_49, %c0_50] : memref<9x16x16xf32, #tpu.memory_space<vmem>>, vector<1x16x16xf32>
    %77 = vector.shape_cast %76 : vector<1x16x16xf32> to vector<16x16xf32>
    %c239_i32 = arith.constant 239 : i32
    %78 = tpu.dynamic_rotate %3 by %c239_i32 dim 1 : vector<16x256xf32>, i32 -> vector<16x256xf32>
    %c8_51 = arith.constant 8 : index
    %c0_52 = arith.constant 0 : index
    %79 = vector.load %arg6[%c8_51, %c0_52] : memref<9x256xf32, #tpu.memory_space<vmem>>, vector<1x256xf32>
    %80 = vector.broadcast %79 : vector<1x256xf32> to vector<16x256xf32>
    %81 = arith.mulf %78, %80 : vector<16x256xf32>
    %cst_53 = arith.constant dense<0.000000e+00> : vector<16x256xf32>
    %82 = tpu.matmul %77, %81, %cst_53 {dimension_numbers = #tpu.dot_dimension_numbers<[1], [0], [0], [1], [0, 0, 1, 1], [], []>} : vector<16x16xf32>, vector<16x256xf32>, vector<16x256xf32> -> vector<16x256xf32>
    %83 = arith.addf %75, %82 : vector<16x256xf32>
    %84 = arith.mulf %83, %11 : vector<16x256xf32>
    %cst_54 = arith.constant 0.000000e+00 : f32
    %85 = vector.broadcast %cst_54 : f32 to vector<16x256xf32>
    %c0_55 = arith.constant 0 : index
    %c0_56 = arith.constant 0 : index
    %c0_57 = arith.constant 0 : index
    %86 = vector.load %arg5[%c0_55, %c0_56, %c0_57] : memref<9x16x16xf32, #tpu.memory_space<vmem>>, vector<1x16x16xf32>
    %87 = vector.shape_cast %86 : vector<1x16x16xf32> to vector<16x16xf32>
    %c17_i32_58 = arith.constant 17 : i32
    %88 = tpu.dynamic_rotate %84 by %c17_i32_58 dim 1 : vector<16x256xf32>, i32 -> vector<16x256xf32>
    %c0_59 = arith.constant 0 : index
    %c0_60 = arith.constant 0 : index
    %89 = vector.load %arg6[%c0_59, %c0_60] : memref<9x256xf32, #tpu.memory_space<vmem>>, vector<1x256xf32>
    %90 = vector.broadcast %89 : vector<1x256xf32> to vector<16x256xf32>
    %91 = arith.mulf %88, %90 : vector<16x256xf32>
    %cst_61 = arith.constant dense<0.000000e+00> : vector<16x256xf32>
    %92 = tpu.matmul %87, %91, %cst_61 {dimension_numbers = #tpu.dot_dimension_numbers<[1], [0], [0], [1], [0, 0, 1, 1], [], []>} : vector<16x16xf32>, vector<16x256xf32>, vector<16x256xf32> -> vector<16x256xf32>
    %93 = arith.addf %85, %92 : vector<16x256xf32>
    %c1_62 = arith.constant 1 : index
    %c0_63 = arith.constant 0 : index
    %c0_64 = arith.constant 0 : index
    %94 = vector.load %arg5[%c1_62, %c0_63, %c0_64] : memref<9x16x16xf32, #tpu.memory_space<vmem>>, vector<1x16x16xf32>
    %95 = vector.shape_cast %94 : vector<1x16x16xf32> to vector<16x16xf32>
    %c16_i32_65 = arith.constant 16 : i32
    %96 = tpu.dynamic_rotate %84 by %c16_i32_65 dim 1 : vector<16x256xf32>, i32 -> vector<16x256xf32>
    %c1_66 = arith.constant 1 : index
    %c0_67 = arith.constant 0 : index
    %97 = vector.load %arg6[%c1_66, %c0_67] : memref<9x256xf32, #tpu.memory_space<vmem>>, vector<1x256xf32>
    %98 = vector.broadcast %97 : vector<1x256xf32> to vector<16x256xf32>
    %99 = arith.mulf %96, %98 : vector<16x256xf32>
    %cst_68 = arith.constant dense<0.000000e+00> : vector<16x256xf32>
    %100 = tpu.matmul %95, %99, %cst_68 {dimension_numbers = #tpu.dot_dimension_numbers<[1], [0], [0], [1], [0, 0, 1, 1], [], []>} : vector<16x16xf32>, vector<16x256xf32>, vector<16x256xf32> -> vector<16x256xf32>
    %101 = arith.addf %93, %100 : vector<16x256xf32>
    %c2_69 = arith.constant 2 : index
    %c0_70 = arith.constant 0 : index
    %c0_71 = arith.constant 0 : index
    %102 = vector.load %arg5[%c2_69, %c0_70, %c0_71] : memref<9x16x16xf32, #tpu.memory_space<vmem>>, vector<1x16x16xf32>
    %103 = vector.shape_cast %102 : vector<1x16x16xf32> to vector<16x16xf32>
    %c15_i32_72 = arith.constant 15 : i32
    %104 = tpu.dynamic_rotate %84 by %c15_i32_72 dim 1 : vector<16x256xf32>, i32 -> vector<16x256xf32>
    %c2_73 = arith.constant 2 : index
    %c0_74 = arith.constant 0 : index
    %105 = vector.load %arg6[%c2_73, %c0_74] : memref<9x256xf32, #tpu.memory_space<vmem>>, vector<1x256xf32>
    %106 = vector.broadcast %105 : vector<1x256xf32> to vector<16x256xf32>
    %107 = arith.mulf %104, %106 : vector<16x256xf32>
    %cst_75 = arith.constant dense<0.000000e+00> : vector<16x256xf32>
    %108 = tpu.matmul %103, %107, %cst_75 {dimension_numbers = #tpu.dot_dimension_numbers<[1], [0], [0], [1], [0, 0, 1, 1], [], []>} : vector<16x16xf32>, vector<16x256xf32>, vector<16x256xf32> -> vector<16x256xf32>
    %109 = arith.addf %101, %108 : vector<16x256xf32>
    %c3_76 = arith.constant 3 : index
    %c0_77 = arith.constant 0 : index
    %c0_78 = arith.constant 0 : index
    %110 = vector.load %arg5[%c3_76, %c0_77, %c0_78] : memref<9x16x16xf32, #tpu.memory_space<vmem>>, vector<1x16x16xf32>
    %111 = vector.shape_cast %110 : vector<1x16x16xf32> to vector<16x16xf32>
    %c1_i32_79 = arith.constant 1 : i32
    %112 = tpu.dynamic_rotate %84 by %c1_i32_79 dim 1 : vector<16x256xf32>, i32 -> vector<16x256xf32>
    %c3_80 = arith.constant 3 : index
    %c0_81 = arith.constant 0 : index
    %113 = vector.load %arg6[%c3_80, %c0_81] : memref<9x256xf32, #tpu.memory_space<vmem>>, vector<1x256xf32>
    %114 = vector.broadcast %113 : vector<1x256xf32> to vector<16x256xf32>
    %115 = arith.mulf %112, %114 : vector<16x256xf32>
    %cst_82 = arith.constant dense<0.000000e+00> : vector<16x256xf32>
    %116 = tpu.matmul %111, %115, %cst_82 {dimension_numbers = #tpu.dot_dimension_numbers<[1], [0], [0], [1], [0, 0, 1, 1], [], []>} : vector<16x16xf32>, vector<16x256xf32>, vector<16x256xf32> -> vector<16x256xf32>
    %117 = arith.addf %109, %116 : vector<16x256xf32>
    %c4_83 = arith.constant 4 : index
    %c0_84 = arith.constant 0 : index
    %c0_85 = arith.constant 0 : index
    %118 = vector.load %arg5[%c4_83, %c0_84, %c0_85] : memref<9x16x16xf32, #tpu.memory_space<vmem>>, vector<1x16x16xf32>
    %119 = vector.shape_cast %118 : vector<1x16x16xf32> to vector<16x16xf32>
    %c4_86 = arith.constant 4 : index
    %c0_87 = arith.constant 0 : index
    %120 = vector.load %arg6[%c4_86, %c0_87] : memref<9x256xf32, #tpu.memory_space<vmem>>, vector<1x256xf32>
    %121 = vector.broadcast %120 : vector<1x256xf32> to vector<16x256xf32>
    %122 = arith.mulf %84, %121 : vector<16x256xf32>
    %cst_88 = arith.constant dense<0.000000e+00> : vector<16x256xf32>
    %123 = tpu.matmul %119, %122, %cst_88 {dimension_numbers = #tpu.dot_dimension_numbers<[1], [0], [0], [1], [0, 0, 1, 1], [], []>} : vector<16x16xf32>, vector<16x256xf32>, vector<16x256xf32> -> vector<16x256xf32>
    %124 = arith.addf %117, %123 : vector<16x256xf32>
    %c5_89 = arith.constant 5 : index
    %c0_90 = arith.constant 0 : index
    %c0_91 = arith.constant 0 : index
    %125 = vector.load %arg5[%c5_89, %c0_90, %c0_91] : memref<9x16x16xf32, #tpu.memory_space<vmem>>, vector<1x16x16xf32>
    %126 = vector.shape_cast %125 : vector<1x16x16xf32> to vector<16x16xf32>
    %c255_i32_92 = arith.constant 255 : i32
    %127 = tpu.dynamic_rotate %84 by %c255_i32_92 dim 1 : vector<16x256xf32>, i32 -> vector<16x256xf32>
    %c5_93 = arith.constant 5 : index
    %c0_94 = arith.constant 0 : index
    %128 = vector.load %arg6[%c5_93, %c0_94] : memref<9x256xf32, #tpu.memory_space<vmem>>, vector<1x256xf32>
    %129 = vector.broadcast %128 : vector<1x256xf32> to vector<16x256xf32>
    %130 = arith.mulf %127, %129 : vector<16x256xf32>
    %cst_95 = arith.constant dense<0.000000e+00> : vector<16x256xf32>
    %131 = tpu.matmul %126, %130, %cst_95 {dimension_numbers = #tpu.dot_dimension_numbers<[1], [0], [0], [1], [0, 0, 1, 1], [], []>} : vector<16x16xf32>, vector<16x256xf32>, vector<16x256xf32> -> vector<16x256xf32>
    %132 = arith.addf %124, %131 : vector<16x256xf32>
    %c6_96 = arith.constant 6 : index
    %c0_97 = arith.constant 0 : index
    %c0_98 = arith.constant 0 : index
    %133 = vector.load %arg5[%c6_96, %c0_97, %c0_98] : memref<9x16x16xf32, #tpu.memory_space<vmem>>, vector<1x16x16xf32>
    %134 = vector.shape_cast %133 : vector<1x16x16xf32> to vector<16x16xf32>
    %c241_i32_99 = arith.constant 241 : i32
    %135 = tpu.dynamic_rotate %84 by %c241_i32_99 dim 1 : vector<16x256xf32>, i32 -> vector<16x256xf32>
    %c6_100 = arith.constant 6 : index
    %c0_101 = arith.constant 0 : index
    %136 = vector.load %arg6[%c6_100, %c0_101] : memref<9x256xf32, #tpu.memory_space<vmem>>, vector<1x256xf32>
    %137 = vector.broadcast %136 : vector<1x256xf32> to vector<16x256xf32>
    %138 = arith.mulf %135, %137 : vector<16x256xf32>
    %cst_102 = arith.constant dense<0.000000e+00> : vector<16x256xf32>
    %139 = tpu.matmul %134, %138, %cst_102 {dimension_numbers = #tpu.dot_dimension_numbers<[1], [0], [0], [1], [0, 0, 1, 1], [], []>} : vector<16x16xf32>, vector<16x256xf32>, vector<16x256xf32> -> vector<16x256xf32>
    %140 = arith.addf %132, %139 : vector<16x256xf32>
    %c7_103 = arith.constant 7 : index
    %c0_104 = arith.constant 0 : index
    %c0_105 = arith.constant 0 : index
    %141 = vector.load %arg5[%c7_103, %c0_104, %c0_105] : memref<9x16x16xf32, #tpu.memory_space<vmem>>, vector<1x16x16xf32>
    %142 = vector.shape_cast %141 : vector<1x16x16xf32> to vector<16x16xf32>
    %c240_i32_106 = arith.constant 240 : i32
    %143 = tpu.dynamic_rotate %84 by %c240_i32_106 dim 1 : vector<16x256xf32>, i32 -> vector<16x256xf32>
    %c7_107 = arith.constant 7 : index
    %c0_108 = arith.constant 0 : index
    %144 = vector.load %arg6[%c7_107, %c0_108] : memref<9x256xf32, #tpu.memory_space<vmem>>, vector<1x256xf32>
    %145 = vector.broadcast %144 : vector<1x256xf32> to vector<16x256xf32>
    %146 = arith.mulf %143, %145 : vector<16x256xf32>
    %cst_109 = arith.constant dense<0.000000e+00> : vector<16x256xf32>
    %147 = tpu.matmul %142, %146, %cst_109 {dimension_numbers = #tpu.dot_dimension_numbers<[1], [0], [0], [1], [0, 0, 1, 1], [], []>} : vector<16x16xf32>, vector<16x256xf32>, vector<16x256xf32> -> vector<16x256xf32>
    %148 = arith.addf %140, %147 : vector<16x256xf32>
    %c8_110 = arith.constant 8 : index
    %c0_111 = arith.constant 0 : index
    %c0_112 = arith.constant 0 : index
    %149 = vector.load %arg5[%c8_110, %c0_111, %c0_112] : memref<9x16x16xf32, #tpu.memory_space<vmem>>, vector<1x16x16xf32>
    %150 = vector.shape_cast %149 : vector<1x16x16xf32> to vector<16x16xf32>
    %c239_i32_113 = arith.constant 239 : i32
    %151 = tpu.dynamic_rotate %84 by %c239_i32_113 dim 1 : vector<16x256xf32>, i32 -> vector<16x256xf32>
    %c8_114 = arith.constant 8 : index
    %c0_115 = arith.constant 0 : index
    %152 = vector.load %arg6[%c8_114, %c0_115] : memref<9x256xf32, #tpu.memory_space<vmem>>, vector<1x256xf32>
    %153 = vector.broadcast %152 : vector<1x256xf32> to vector<16x256xf32>
    %154 = arith.mulf %151, %153 : vector<16x256xf32>
    %cst_116 = arith.constant dense<0.000000e+00> : vector<16x256xf32>
    %155 = tpu.matmul %150, %154, %cst_116 {dimension_numbers = #tpu.dot_dimension_numbers<[1], [0], [0], [1], [0, 0, 1, 1], [], []>} : vector<16x16xf32>, vector<16x256xf32>, vector<16x256xf32> -> vector<16x256xf32>
    %156 = arith.addf %148, %155 : vector<16x256xf32>
    %c0_117 = arith.constant 0 : index
    %c0_118 = arith.constant 0 : index
    %c0_119 = arith.constant 0 : index
    %157 = vector.load %arg7[%c0_117, %c0_118, %c0_119] : memref<2x16x256xf32, #tpu.memory_space<vmem>>, vector<1x16x256xf32>
    %158 = vector.shape_cast %157 : vector<1x16x256xf32> to vector<16x256xf32>
    %159 = vector.shape_cast %156 : vector<16x256xf32> to vector<1x16x256xf32>
    tpu.vector_store %arg7[%c0_117, %c0_118, %c0_119], %159 {strides = array<i32>} : memref<2x16x256xf32, #tpu.memory_space<vmem>>, vector<1x16x256xf32>,
    %c1_120 = arith.constant 1 : index
    %c0_121 = arith.constant 0 : index
    %c0_122 = arith.constant 0 : index
    %160 = vector.load %arg1[%c1_120, %c0_121, %c0_122] : memref<2x16x256xf32, #tpu.memory_space<vmem>>, vector<1x16x256xf32>
    %161 = vector.shape_cast %160 : vector<1x16x256xf32> to vector<16x256xf32>
    %cst_123 = arith.constant dense<0.000000e+00> : vector<16x256xf32>
    %162 = tpu.matmul %0, %161, %cst_123 {dimension_numbers = #tpu.dot_dimension_numbers<[1], [0], [0], [1], [0, 0, 1, 1], [], []>} : vector<16x16xf32>, vector<16x256xf32>, vector<16x256xf32> -> vector<16x256xf32>
    %163 = vector.broadcast %1 : vector<16x1xf32> to vector<16x256xf32>
    %164 = arith.addf %162, %163 : vector<16x256xf32>
    %165 = arith.negf %164 : vector<16x256xf32>
    %166 = math.exp %165 : vector<16x256xf32>
    %cst_124 = arith.constant 1.000000e+00 : f32
    %167 = vector.broadcast %cst_124 : f32 to vector<16x256xf32>
    %168 = arith.addf %167, %166 : vector<16x256xf32>
    %169 = arith.divf %167, %168 : vector<16x256xf32>
    %cst_125 = arith.constant 0.000000e+00 : f32
    %170 = vector.broadcast %cst_125 : f32 to vector<16x256xf32>
    %c0_126 = arith.constant 0 : index
    %c0_127 = arith.constant 0 : index
    %c0_128 = arith.constant 0 : index
    %171 = vector.load %arg4[%c0_126, %c0_127, %c0_128] : memref<9x16x16xf32, #tpu.memory_space<vmem>>, vector<1x16x16xf32>
    %172 = vector.shape_cast %171 : vector<1x16x16xf32> to vector<16x16xf32>
    %c17_i32_129 = arith.constant 17 : i32
    %173 = tpu.dynamic_rotate %161 by %c17_i32_129 dim 1 : vector<16x256xf32>, i32 -> vector<16x256xf32>
    %c0_130 = arith.constant 0 : index
    %c0_131 = arith.constant 0 : index
    %174 = vector.load %arg6[%c0_130, %c0_131] : memref<9x256xf32, #tpu.memory_space<vmem>>, vector<1x256xf32>
    %175 = vector.broadcast %174 : vector<1x256xf32> to vector<16x256xf32>
    %176 = arith.mulf %173, %175 : vector<16x256xf32>
    %cst_132 = arith.constant dense<0.000000e+00> : vector<16x256xf32>
    %177 = tpu.matmul %172, %176, %cst_132 {dimension_numbers = #tpu.dot_dimension_numbers<[1], [0], [0], [1], [0, 0, 1, 1], [], []>} : vector<16x16xf32>, vector<16x256xf32>, vector<16x256xf32> -> vector<16x256xf32>
    %178 = arith.addf %170, %177 : vector<16x256xf32>
    %c1_133 = arith.constant 1 : index
    %c0_134 = arith.constant 0 : index
    %c0_135 = arith.constant 0 : index
    %179 = vector.load %arg4[%c1_133, %c0_134, %c0_135] : memref<9x16x16xf32, #tpu.memory_space<vmem>>, vector<1x16x16xf32>
    %180 = vector.shape_cast %179 : vector<1x16x16xf32> to vector<16x16xf32>
    %c16_i32_136 = arith.constant 16 : i32
    %181 = tpu.dynamic_rotate %161 by %c16_i32_136 dim 1 : vector<16x256xf32>, i32 -> vector<16x256xf32>
    %c1_137 = arith.constant 1 : index
    %c0_138 = arith.constant 0 : index
    %182 = vector.load %arg6[%c1_137, %c0_138] : memref<9x256xf32, #tpu.memory_space<vmem>>, vector<1x256xf32>
    %183 = vector.broadcast %182 : vector<1x256xf32> to vector<16x256xf32>
    %184 = arith.mulf %181, %183 : vector<16x256xf32>
    %cst_139 = arith.constant dense<0.000000e+00> : vector<16x256xf32>
    %185 = tpu.matmul %180, %184, %cst_139 {dimension_numbers = #tpu.dot_dimension_numbers<[1], [0], [0], [1], [0, 0, 1, 1], [], []>} : vector<16x16xf32>, vector<16x256xf32>, vector<16x256xf32> -> vector<16x256xf32>
    %186 = arith.addf %178, %185 : vector<16x256xf32>
    %c2_140 = arith.constant 2 : index
    %c0_141 = arith.constant 0 : index
    %c0_142 = arith.constant 0 : index
    %187 = vector.load %arg4[%c2_140, %c0_141, %c0_142] : memref<9x16x16xf32, #tpu.memory_space<vmem>>, vector<1x16x16xf32>
    %188 = vector.shape_cast %187 : vector<1x16x16xf32> to vector<16x16xf32>
    %c15_i32_143 = arith.constant 15 : i32
    %189 = tpu.dynamic_rotate %161 by %c15_i32_143 dim 1 : vector<16x256xf32>, i32 -> vector<16x256xf32>
    %c2_144 = arith.constant 2 : index
    %c0_145 = arith.constant 0 : index
    %190 = vector.load %arg6[%c2_144, %c0_145] : memref<9x256xf32, #tpu.memory_space<vmem>>, vector<1x256xf32>
    %191 = vector.broadcast %190 : vector<1x256xf32> to vector<16x256xf32>
    %192 = arith.mulf %189, %191 : vector<16x256xf32>
    %cst_146 = arith.constant dense<0.000000e+00> : vector<16x256xf32>
    %193 = tpu.matmul %188, %192, %cst_146 {dimension_numbers = #tpu.dot_dimension_numbers<[1], [0], [0], [1], [0, 0, 1, 1], [], []>} : vector<16x16xf32>, vector<16x256xf32>, vector<16x256xf32> -> vector<16x256xf32>
    %194 = arith.addf %186, %193 : vector<16x256xf32>
    %c3_147 = arith.constant 3 : index
    %c0_148 = arith.constant 0 : index
    %c0_149 = arith.constant 0 : index
    %195 = vector.load %arg4[%c3_147, %c0_148, %c0_149] : memref<9x16x16xf32, #tpu.memory_space<vmem>>, vector<1x16x16xf32>
    %196 = vector.shape_cast %195 : vector<1x16x16xf32> to vector<16x16xf32>
    %c1_i32_150 = arith.constant 1 : i32
    %197 = tpu.dynamic_rotate %161 by %c1_i32_150 dim 1 : vector<16x256xf32>, i32 -> vector<16x256xf32>
    %c3_151 = arith.constant 3 : index
    %c0_152 = arith.constant 0 : index
    %198 = vector.load %arg6[%c3_151, %c0_152] : memref<9x256xf32, #tpu.memory_space<vmem>>, vector<1x256xf32>
    %199 = vector.broadcast %198 : vector<1x256xf32> to vector<16x256xf32>
    %200 = arith.mulf %197, %199 : vector<16x256xf32>
    %cst_153 = arith.constant dense<0.000000e+00> : vector<16x256xf32>
    %201 = tpu.matmul %196, %200, %cst_153 {dimension_numbers = #tpu.dot_dimension_numbers<[1], [0], [0], [1], [0, 0, 1, 1], [], []>} : vector<16x16xf32>, vector<16x256xf32>, vector<16x256xf32> -> vector<16x256xf32>
    %202 = arith.addf %194, %201 : vector<16x256xf32>
    %c4_154 = arith.constant 4 : index
    %c0_155 = arith.constant 0 : index
    %c0_156 = arith.constant 0 : index
    %203 = vector.load %arg4[%c4_154, %c0_155, %c0_156] : memref<9x16x16xf32, #tpu.memory_space<vmem>>, vector<1x16x16xf32>
    %204 = vector.shape_cast %203 : vector<1x16x16xf32> to vector<16x16xf32>
    %c4_157 = arith.constant 4 : index
    %c0_158 = arith.constant 0 : index
    %205 = vector.load %arg6[%c4_157, %c0_158] : memref<9x256xf32, #tpu.memory_space<vmem>>, vector<1x256xf32>
    %206 = vector.broadcast %205 : vector<1x256xf32> to vector<16x256xf32>
    %207 = arith.mulf %161, %206 : vector<16x256xf32>
    %cst_159 = arith.constant dense<0.000000e+00> : vector<16x256xf32>
    %208 = tpu.matmul %204, %207, %cst_159 {dimension_numbers = #tpu.dot_dimension_numbers<[1], [0], [0], [1], [0, 0, 1, 1], [], []>} : vector<16x16xf32>, vector<16x256xf32>, vector<16x256xf32> -> vector<16x256xf32>
    %209 = arith.addf %202, %208 : vector<16x256xf32>
    %c5_160 = arith.constant 5 : index
    %c0_161 = arith.constant 0 : index
    %c0_162 = arith.constant 0 : index
    %210 = vector.load %arg4[%c5_160, %c0_161, %c0_162] : memref<9x16x16xf32, #tpu.memory_space<vmem>>, vector<1x16x16xf32>
    %211 = vector.shape_cast %210 : vector<1x16x16xf32> to vector<16x16xf32>
    %c255_i32_163 = arith.constant 255 : i32
    %212 = tpu.dynamic_rotate %161 by %c255_i32_163 dim 1 : vector<16x256xf32>, i32 -> vector<16x256xf32>
    %c5_164 = arith.constant 5 : index
    %c0_165 = arith.constant 0 : index
    %213 = vector.load %arg6[%c5_164, %c0_165] : memref<9x256xf32, #tpu.memory_space<vmem>>, vector<1x256xf32>
    %214 = vector.broadcast %213 : vector<1x256xf32> to vector<16x256xf32>
    %215 = arith.mulf %212, %214 : vector<16x256xf32>
    %cst_166 = arith.constant dense<0.000000e+00> : vector<16x256xf32>
    %216 = tpu.matmul %211, %215, %cst_166 {dimension_numbers = #tpu.dot_dimension_numbers<[1], [0], [0], [1], [0, 0, 1, 1], [], []>} : vector<16x16xf32>, vector<16x256xf32>, vector<16x256xf32> -> vector<16x256xf32>
    %217 = arith.addf %209, %216 : vector<16x256xf32>
    %c6_167 = arith.constant 6 : index
    %c0_168 = arith.constant 0 : index
    %c0_169 = arith.constant 0 : index
    %218 = vector.load %arg4[%c6_167, %c0_168, %c0_169] : memref<9x16x16xf32, #tpu.memory_space<vmem>>, vector<1x16x16xf32>
    %219 = vector.shape_cast %218 : vector<1x16x16xf32> to vector<16x16xf32>
    %c241_i32_170 = arith.constant 241 : i32
    %220 = tpu.dynamic_rotate %161 by %c241_i32_170 dim 1 : vector<16x256xf32>, i32 -> vector<16x256xf32>
    %c6_171 = arith.constant 6 : index
    %c0_172 = arith.constant 0 : index
    %221 = vector.load %arg6[%c6_171, %c0_172] : memref<9x256xf32, #tpu.memory_space<vmem>>, vector<1x256xf32>
    %222 = vector.broadcast %221 : vector<1x256xf32> to vector<16x256xf32>
    %223 = arith.mulf %220, %222 : vector<16x256xf32>
    %cst_173 = arith.constant dense<0.000000e+00> : vector<16x256xf32>
    %224 = tpu.matmul %219, %223, %cst_173 {dimension_numbers = #tpu.dot_dimension_numbers<[1], [0], [0], [1], [0, 0, 1, 1], [], []>} : vector<16x16xf32>, vector<16x256xf32>, vector<16x256xf32> -> vector<16x256xf32>
    %225 = arith.addf %217, %224 : vector<16x256xf32>
    %c7_174 = arith.constant 7 : index
    %c0_175 = arith.constant 0 : index
    %c0_176 = arith.constant 0 : index
    %226 = vector.load %arg4[%c7_174, %c0_175, %c0_176] : memref<9x16x16xf32, #tpu.memory_space<vmem>>, vector<1x16x16xf32>
    %227 = vector.shape_cast %226 : vector<1x16x16xf32> to vector<16x16xf32>
    %c240_i32_177 = arith.constant 240 : i32
    %228 = tpu.dynamic_rotate %161 by %c240_i32_177 dim 1 : vector<16x256xf32>, i32 -> vector<16x256xf32>
    %c7_178 = arith.constant 7 : index
    %c0_179 = arith.constant 0 : index
    %229 = vector.load %arg6[%c7_178, %c0_179] : memref<9x256xf32, #tpu.memory_space<vmem>>, vector<1x256xf32>
    %230 = vector.broadcast %229 : vector<1x256xf32> to vector<16x256xf32>
    %231 = arith.mulf %228, %230 : vector<16x256xf32>
    %cst_180 = arith.constant dense<0.000000e+00> : vector<16x256xf32>
    %232 = tpu.matmul %227, %231, %cst_180 {dimension_numbers = #tpu.dot_dimension_numbers<[1], [0], [0], [1], [0, 0, 1, 1], [], []>} : vector<16x16xf32>, vector<16x256xf32>, vector<16x256xf32> -> vector<16x256xf32>
    %233 = arith.addf %225, %232 : vector<16x256xf32>
    %c8_181 = arith.constant 8 : index
    %c0_182 = arith.constant 0 : index
    %c0_183 = arith.constant 0 : index
    %234 = vector.load %arg4[%c8_181, %c0_182, %c0_183] : memref<9x16x16xf32, #tpu.memory_space<vmem>>, vector<1x16x16xf32>
    %235 = vector.shape_cast %234 : vector<1x16x16xf32> to vector<16x16xf32>
    %c239_i32_184 = arith.constant 239 : i32
    %236 = tpu.dynamic_rotate %161 by %c239_i32_184 dim 1 : vector<16x256xf32>, i32 -> vector<16x256xf32>
    %c8_185 = arith.constant 8 : index
    %c0_186 = arith.constant 0 : index
    %237 = vector.load %arg6[%c8_185, %c0_186] : memref<9x256xf32, #tpu.memory_space<vmem>>, vector<1x256xf32>
    %238 = vector.broadcast %237 : vector<1x256xf32> to vector<16x256xf32>
    %239 = arith.mulf %236, %238 : vector<16x256xf32>
    %cst_187 = arith.constant dense<0.000000e+00> : vector<16x256xf32>
    %240 = tpu.matmul %235, %239, %cst_187 {dimension_numbers = #tpu.dot_dimension_numbers<[1], [0], [0], [1], [0, 0, 1, 1], [], []>} : vector<16x16xf32>, vector<16x256xf32>, vector<16x256xf32> -> vector<16x256xf32>
    %241 = arith.addf %233, %240 : vector<16x256xf32>
    %242 = arith.mulf %241, %169 : vector<16x256xf32>
    %cst_188 = arith.constant 0.000000e+00 : f32
    %243 = vector.broadcast %cst_188 : f32 to vector<16x256xf32>
    %c0_189 = arith.constant 0 : index
    %c0_190 = arith.constant 0 : index
    %c0_191 = arith.constant 0 : index
    %244 = vector.load %arg5[%c0_189, %c0_190, %c0_191] : memref<9x16x16xf32, #tpu.memory_space<vmem>>, vector<1x16x16xf32>
    %245 = vector.shape_cast %244 : vector<1x16x16xf32> to vector<16x16xf32>
    %c17_i32_192 = arith.constant 17 : i32
    %246 = tpu.dynamic_rotate %242 by %c17_i32_192 dim 1 : vector<16x256xf32>, i32 -> vector<16x256xf32>
    %c0_193 = arith.constant 0 : index
    %c0_194 = arith.constant 0 : index
    %247 = vector.load %arg6[%c0_193, %c0_194] : memref<9x256xf32, #tpu.memory_space<vmem>>, vector<1x256xf32>
    %248 = vector.broadcast %247 : vector<1x256xf32> to vector<16x256xf32>
    %249 = arith.mulf %246, %248 : vector<16x256xf32>
    %cst_195 = arith.constant dense<0.000000e+00> : vector<16x256xf32>
    %250 = tpu.matmul %245, %249, %cst_195 {dimension_numbers = #tpu.dot_dimension_numbers<[1], [0], [0], [1], [0, 0, 1, 1], [], []>} : vector<16x16xf32>, vector<16x256xf32>, vector<16x256xf32> -> vector<16x256xf32>
    %251 = arith.addf %243, %250 : vector<16x256xf32>
    %c1_196 = arith.constant 1 : index
    %c0_197 = arith.constant 0 : index
    %c0_198 = arith.constant 0 : index
    %252 = vector.load %arg5[%c1_196, %c0_197, %c0_198] : memref<9x16x16xf32, #tpu.memory_space<vmem>>, vector<1x16x16xf32>
    %253 = vector.shape_cast %252 : vector<1x16x16xf32> to vector<16x16xf32>
    %c16_i32_199 = arith.constant 16 : i32
    %254 = tpu.dynamic_rotate %242 by %c16_i32_199 dim 1 : vector<16x256xf32>, i32 -> vector<16x256xf32>
    %c1_200 = arith.constant 1 : index
    %c0_201 = arith.constant 0 : index
    %255 = vector.load %arg6[%c1_200, %c0_201] : memref<9x256xf32, #tpu.memory_space<vmem>>, vector<1x256xf32>
    %256 = vector.broadcast %255 : vector<1x256xf32> to vector<16x256xf32>
    %257 = arith.mulf %254, %256 : vector<16x256xf32>
    %cst_202 = arith.constant dense<0.000000e+00> : vector<16x256xf32>
    %258 = tpu.matmul %253, %257, %cst_202 {dimension_numbers = #tpu.dot_dimension_numbers<[1], [0], [0], [1], [0, 0, 1, 1], [], []>} : vector<16x16xf32>, vector<16x256xf32>, vector<16x256xf32> -> vector<16x256xf32>
    %259 = arith.addf %251, %258 : vector<16x256xf32>
    %c2_203 = arith.constant 2 : index
    %c0_204 = arith.constant 0 : index
    %c0_205 = arith.constant 0 : index
    %260 = vector.load %arg5[%c2_203, %c0_204, %c0_205] : memref<9x16x16xf32, #tpu.memory_space<vmem>>, vector<1x16x16xf32>
    %261 = vector.shape_cast %260 : vector<1x16x16xf32> to vector<16x16xf32>
    %c15_i32_206 = arith.constant 15 : i32
    %262 = tpu.dynamic_rotate %242 by %c15_i32_206 dim 1 : vector<16x256xf32>, i32 -> vector<16x256xf32>
    %c2_207 = arith.constant 2 : index
    %c0_208 = arith.constant 0 : index
    %263 = vector.load %arg6[%c2_207, %c0_208] : memref<9x256xf32, #tpu.memory_space<vmem>>, vector<1x256xf32>
    %264 = vector.broadcast %263 : vector<1x256xf32> to vector<16x256xf32>
    %265 = arith.mulf %262, %264 : vector<16x256xf32>
    %cst_209 = arith.constant dense<0.000000e+00> : vector<16x256xf32>
    %266 = tpu.matmul %261, %265, %cst_209 {dimension_numbers = #tpu.dot_dimension_numbers<[1], [0], [0], [1], [0, 0, 1, 1], [], []>} : vector<16x16xf32>, vector<16x256xf32>, vector<16x256xf32> -> vector<16x256xf32>
    %267 = arith.addf %259, %266 : vector<16x256xf32>
    %c3_210 = arith.constant 3 : index
    %c0_211 = arith.constant 0 : index
    %c0_212 = arith.constant 0 : index
    %268 = vector.load %arg5[%c3_210, %c0_211, %c0_212] : memref<9x16x16xf32, #tpu.memory_space<vmem>>, vector<1x16x16xf32>
    %269 = vector.shape_cast %268 : vector<1x16x16xf32> to vector<16x16xf32>
    %c1_i32_213 = arith.constant 1 : i32
    %270 = tpu.dynamic_rotate %242 by %c1_i32_213 dim 1 : vector<16x256xf32>, i32 -> vector<16x256xf32>
    %c3_214 = arith.constant 3 : index
    %c0_215 = arith.constant 0 : index
    %271 = vector.load %arg6[%c3_214, %c0_215] : memref<9x256xf32, #tpu.memory_space<vmem>>, vector<1x256xf32>
    %272 = vector.broadcast %271 : vector<1x256xf32> to vector<16x256xf32>
    %273 = arith.mulf %270, %272 : vector<16x256xf32>
    %cst_216 = arith.constant dense<0.000000e+00> : vector<16x256xf32>
    %274 = tpu.matmul %269, %273, %cst_216 {dimension_numbers = #tpu.dot_dimension_numbers<[1], [0], [0], [1], [0, 0, 1, 1], [], []>} : vector<16x16xf32>, vector<16x256xf32>, vector<16x256xf32> -> vector<16x256xf32>
    %275 = arith.addf %267, %274 : vector<16x256xf32>
    %c4_217 = arith.constant 4 : index
    %c0_218 = arith.constant 0 : index
    %c0_219 = arith.constant 0 : index
    %276 = vector.load %arg5[%c4_217, %c0_218, %c0_219] : memref<9x16x16xf32, #tpu.memory_space<vmem>>, vector<1x16x16xf32>
    %277 = vector.shape_cast %276 : vector<1x16x16xf32> to vector<16x16xf32>
    %c4_220 = arith.constant 4 : index
    %c0_221 = arith.constant 0 : index
    %278 = vector.load %arg6[%c4_220, %c0_221] : memref<9x256xf32, #tpu.memory_space<vmem>>, vector<1x256xf32>
    %279 = vector.broadcast %278 : vector<1x256xf32> to vector<16x256xf32>
    %280 = arith.mulf %242, %279 : vector<16x256xf32>
    %cst_222 = arith.constant dense<0.000000e+00> : vector<16x256xf32>
    %281 = tpu.matmul %277, %280, %cst_222 {dimension_numbers = #tpu.dot_dimension_numbers<[1], [0], [0], [1], [0, 0, 1, 1], [], []>} : vector<16x16xf32>, vector<16x256xf32>, vector<16x256xf32> -> vector<16x256xf32>
    %282 = arith.addf %275, %281 : vector<16x256xf32>
    %c5_223 = arith.constant 5 : index
    %c0_224 = arith.constant 0 : index
    %c0_225 = arith.constant 0 : index
    %283 = vector.load %arg5[%c5_223, %c0_224, %c0_225] : memref<9x16x16xf32, #tpu.memory_space<vmem>>, vector<1x16x16xf32>
    %284 = vector.shape_cast %283 : vector<1x16x16xf32> to vector<16x16xf32>
    %c255_i32_226 = arith.constant 255 : i32
    %285 = tpu.dynamic_rotate %242 by %c255_i32_226 dim 1 : vector<16x256xf32>, i32 -> vector<16x256xf32>
    %c5_227 = arith.constant 5 : index
    %c0_228 = arith.constant 0 : index
    %286 = vector.load %arg6[%c5_227, %c0_228] : memref<9x256xf32, #tpu.memory_space<vmem>>, vector<1x256xf32>
    %287 = vector.broadcast %286 : vector<1x256xf32> to vector<16x256xf32>
    %288 = arith.mulf %285, %287 : vector<16x256xf32>
    %cst_229 = arith.constant dense<0.000000e+00> : vector<16x256xf32>
    %289 = tpu.matmul %284, %288, %cst_229 {dimension_numbers = #tpu.dot_dimension_numbers<[1], [0], [0], [1], [0, 0, 1, 1], [], []>} : vector<16x16xf32>, vector<16x256xf32>, vector<16x256xf32> -> vector<16x256xf32>
    %290 = arith.addf %282, %289 : vector<16x256xf32>
    %c6_230 = arith.constant 6 : index
    %c0_231 = arith.constant 0 : index
    %c0_232 = arith.constant 0 : index
    %291 = vector.load %arg5[%c6_230, %c0_231, %c0_232] : memref<9x16x16xf32, #tpu.memory_space<vmem>>, vector<1x16x16xf32>
    %292 = vector.shape_cast %291 : vector<1x16x16xf32> to vector<16x16xf32>
    %c241_i32_233 = arith.constant 241 : i32
    %293 = tpu.dynamic_rotate %242 by %c241_i32_233 dim 1 : vector<16x256xf32>, i32 -> vector<16x256xf32>
    %c6_234 = arith.constant 6 : index
    %c0_235 = arith.constant 0 : index
    %294 = vector.load %arg6[%c6_234, %c0_235] : memref<9x256xf32, #tpu.memory_space<vmem>>, vector<1x256xf32>
    %295 = vector.broadcast %294 : vector<1x256xf32> to vector<16x256xf32>
    %296 = arith.mulf %293, %295 : vector<16x256xf32>
    %cst_236 = arith.constant dense<0.000000e+00> : vector<16x256xf32>
    %297 = tpu.matmul %292, %296, %cst_236 {dimension_numbers = #tpu.dot_dimension_numbers<[1], [0], [0], [1], [0, 0, 1, 1], [], []>} : vector<16x16xf32>, vector<16x256xf32>, vector<16x256xf32> -> vector<16x256xf32>
    %298 = arith.addf %290, %297 : vector<16x256xf32>
    %c7_237 = arith.constant 7 : index
    %c0_238 = arith.constant 0 : index
    %c0_239 = arith.constant 0 : index
    %299 = vector.load %arg5[%c7_237, %c0_238, %c0_239] : memref<9x16x16xf32, #tpu.memory_space<vmem>>, vector<1x16x16xf32>
    %300 = vector.shape_cast %299 : vector<1x16x16xf32> to vector<16x16xf32>
    %c240_i32_240 = arith.constant 240 : i32
    %301 = tpu.dynamic_rotate %242 by %c240_i32_240 dim 1 : vector<16x256xf32>, i32 -> vector<16x256xf32>
    %c7_241 = arith.constant 7 : index
    %c0_242 = arith.constant 0 : index
    %302 = vector.load %arg6[%c7_241, %c0_242] : memref<9x256xf32, #tpu.memory_space<vmem>>, vector<1x256xf32>
    %303 = vector.broadcast %302 : vector<1x256xf32> to vector<16x256xf32>
    %304 = arith.mulf %301, %303 : vector<16x256xf32>
    %cst_243 = arith.constant dense<0.000000e+00> : vector<16x256xf32>
    %305 = tpu.matmul %300, %304, %cst_243 {dimension_numbers = #tpu.dot_dimension_numbers<[1], [0], [0], [1], [0, 0, 1, 1], [], []>} : vector<16x16xf32>, vector<16x256xf32>, vector<16x256xf32> -> vector<16x256xf32>
    %306 = arith.addf %298, %305 : vector<16x256xf32>
    %c8_244 = arith.constant 8 : index
    %c0_245 = arith.constant 0 : index
    %c0_246 = arith.constant 0 : index
    %307 = vector.load %arg5[%c8_244, %c0_245, %c0_246] : memref<9x16x16xf32, #tpu.memory_space<vmem>>, vector<1x16x16xf32>
    %308 = vector.shape_cast %307 : vector<1x16x16xf32> to vector<16x16xf32>
    %c239_i32_247 = arith.constant 239 : i32
    %309 = tpu.dynamic_rotate %242 by %c239_i32_247 dim 1 : vector<16x256xf32>, i32 -> vector<16x256xf32>
    %c8_248 = arith.constant 8 : index
    %c0_249 = arith.constant 0 : index
    %310 = vector.load %arg6[%c8_248, %c0_249] : memref<9x256xf32, #tpu.memory_space<vmem>>, vector<1x256xf32>
    %311 = vector.broadcast %310 : vector<1x256xf32> to vector<16x256xf32>
    %312 = arith.mulf %309, %311 : vector<16x256xf32>
    %cst_250 = arith.constant dense<0.000000e+00> : vector<16x256xf32>
    %313 = tpu.matmul %308, %312, %cst_250 {dimension_numbers = #tpu.dot_dimension_numbers<[1], [0], [0], [1], [0, 0, 1, 1], [], []>} : vector<16x16xf32>, vector<16x256xf32>, vector<16x256xf32> -> vector<16x256xf32>
    %314 = arith.addf %306, %313 : vector<16x256xf32>
    %c1_251 = arith.constant 1 : index
    %c0_252 = arith.constant 0 : index
    %c0_253 = arith.constant 0 : index
    %315 = vector.load %arg7[%c1_251, %c0_252, %c0_253] : memref<2x16x256xf32, #tpu.memory_space<vmem>>, vector<1x16x256xf32>
    %316 = vector.shape_cast %315 : vector<1x16x256xf32> to vector<16x256xf32>
    %317 = vector.shape_cast %314 : vector<16x256xf32> to vector<1x16x256xf32>
    tpu.vector_store %arg7[%c1_251, %c0_252, %c0_253], %317 {strides = array<i32>} : memref<2x16x256xf32, #tpu.memory_space<vmem>>, vector<1x16x256xf32>,
    return
  }
  func.func @transform_0(%arg0: i32) -> (i32, i32, i32) {
    %c0_i32 = arith.constant 0 : i32
    %c0_i32_0 = arith.constant 0 : i32
    %c0_i32_1 = arith.constant 0 : i32
    return %arg0, %c0_i32, %c0_i32_0 : i32, i32, i32
  }
  func.func @transform_1(%arg0: i32) -> (i32, i32) {
    %c0_i32 = arith.constant 0 : i32
    %c0_i32_0 = arith.constant 0 : i32
    %c0_i32_1 = arith.constant 0 : i32
    return %c0_i32, %c0_i32_0 : i32, i32
  }
  func.func @transform_2(%arg0: i32) -> (i32, i32) {
    %c0_i32 = arith.constant 0 : i32
    %c0_i32_0 = arith.constant 0 : i32
    %c0_i32_1 = arith.constant 0 : i32
    return %c0_i32, %c0_i32_0 : i32, i32
  }
  func.func @transform_3(%arg0: i32) -> (i32, i32, i32) {
    %c0_i32 = arith.constant 0 : i32
    %c0_i32_0 = arith.constant 0 : i32
    %c0_i32_1 = arith.constant 0 : i32
    %c0_i32_2 = arith.constant 0 : i32
    return %c0_i32, %c0_i32_0, %c0_i32_1 : i32, i32, i32
  }
  func.func @transform_4(%arg0: i32) -> (i32, i32, i32) {
    %c0_i32 = arith.constant 0 : i32
    %c0_i32_0 = arith.constant 0 : i32
    %c0_i32_1 = arith.constant 0 : i32
    %c0_i32_2 = arith.constant 0 : i32
    return %c0_i32, %c0_i32_0, %c0_i32_1 : i32, i32, i32
  }
  func.func @transform_5(%arg0: i32) -> (i32, i32) {
    %c0_i32 = arith.constant 0 : i32
    %c0_i32_0 = arith.constant 0 : i32
    %c0_i32_1 = arith.constant 0 : i32
    return %c0_i32, %c0_i32_0 : i32, i32
  }
  func.func @transform_6(%arg0: i32) -> (i32, i32, i32) {
    %c0_i32 = arith.constant 0 : i32
    %c0_i32_0 = arith.constant 0 : i32
    %c0_i32_1 = arith.constant 0 : i32
    return %arg0, %c0_i32, %c0_i32_0 : i32, i32, i32
  }
}

</mosaic_0001>

<bundles_post_ra>
// kernel: tpu_custom_call.1
= control target key start
LH: loop header
LB: loop body
LE: loop exit
PB: predicated region body
PF: predicated region fallthrough
CT: control target
= control target key end

     0   :  { %11 = vsyncpa [#allocation3], 0  ;;  %s6074_s0 = inlined_call_operand.hbm [shape: f32[2,16,256], index: 0, kind: input, shape index: {}]   ;;  %s6075_s1 = inlined_call_operand.hbm [shape: f32[16,16], index: 1, kind: input, shape index: {}]   ;;  %s6076_s2 = inlined_call_operand.vmem [shape: f32[16,1], index: 2, kind: input, shape index: {}]   ;;  %s6077_s3 = inlined_call_operand.hbm [shape: f32[9,16,16], index: 3, kind: input, shape index: {}]   ;;  %s6078_s4 = inlined_call_operand.hbm [shape: f32[9,16,16], index: 4, kind: input, shape index: {}]   ;;  %s6079_s5 = inlined_call_operand.vmem [shape: f32[9,256], index: 5, kind: input, shape index: {}]   ;;  %s6080_s6 = inlined_call_operand.hbm [shape: f32[2,16,256], index: 6, kind: output, shape index: {}]  }
   0x1   :  { %12 = vsyncpa [#allocation6], 0 }
   0x2   :  { %13 = vsyncpa [#allocation9], 0 }
   0x3   :  { %14 = vsyncpa [#allocation4], 0  ;;  %s4847_s21 = smov [#allocation5]   ;;  %s4729_s25 = scalar_lea.hbm %s6075_s1, 256 }
   0x4   :  { %s32_s22 = sshll.u32 %s4847_s21, 4  ;;  %p4730_p0 = scmp.ne.s32.totalorder %s6075_s1, %s4729_s25  ;;  %s33_s22 = int_to_ptr.vmem [resolvable:$true] %s32_s22 }
   0x5   :  { %p4733_p1 = scmp.lt.u32.totalorder %s4729_s25, %s6075_s1 }
   0x7   :  { %p4735_p2 = pnand %p4733_p1, %p4730_p0 }
   0x9   :  { %4738 = shalt.err (!%p4735_p2)
}
   0xa   :  { %s4739_s30 = scalar_lea.vmem %s33_s22, 256  ;;  %p4744_p4 = scmp.lt.s32.totalorder %s33_s22, %s33_s22 }
   0xb   :  { %p4740_p3 = scmp.ne.s32.totalorder %s33_s22, %s4739_s30  ;;  %p4745_p5 = scmp.lt.s32.totalorder %s4739_s30, %s4739_s30 }
   0xd   :  { %p4746_p6 = por %p4745_p5, %p4744_p4 }
   0xf   :  { %p4747_p7 = pnand %p4746_p6, %p4740_p3 }
  0x11   :  { %4750 = shalt.err (!%p4747_p7)
}
  0x12   :  { %s4848_s7 = smov 128   ;;  %s4849_s8 = smov 8  }
  0x13   :  { %38 = dma.hbm_to_vmem [thread:$0]  %s6075_s1, 256, %s33_s22, [#allocation6], %s4848_s7, %s4848_s7, %s4849_s8  }
  0x14   :  { %s4850_s11 = smov [#allocation2]   ;;  %s4751_s15 = scalar_lea.hbm %s6074_s0, 1024 }
  0x15   :  { %s20_s12 = sshll.u32 %s4850_s11, 4  ;;  %p4752_p8 = scmp.ne.s32.totalorder %s6074_s0, %s4751_s15  ;;  %s21_s12 = int_to_ptr.vmem [resolvable:$true] %s20_s12 }
  0x16   :  { %p4755_p9 = scmp.lt.u32.totalorder %s4751_s15, %s6074_s0 }
  0x18   :  { %p4757_p10 = pnand %p4755_p9, %p4752_p8 }
  0x1a   :  { %4760 = shalt.err (!%p4757_p10)
}
  0x1b   :  { %s4761_s20 = scalar_lea.vmem %s21_s12, 1024  ;;  %p4766_p12 = scmp.lt.s32.totalorder %s21_s12, %s21_s12 }
  0x1c   :  { %p4762_p11 = scmp.ne.s32.totalorder %s21_s12, %s4761_s20  ;;  %p4767_p13 = scmp.lt.s32.totalorder %s4761_s20, %s4761_s20 }
  0x1e   :  { %p4768_p0 = por %p4767_p13, %p4766_p12 }
  0x20   :  { %p4769_p1 = pnand %p4768_p0, %p4762_p11 }
  0x22   :  { %4772 = shalt.err (!%p4769_p1)
}
  0x23   :  { %s4851_s1 = smov 256   ;;  %s4852_s21 = smov 16  }
  0x24   :  { %26 = dma.hbm_to_vmem [thread:$0]  %s6074_s0, 1024, %s21_s12, [#allocation3], %s4851_s1, %s4851_s1, %s4852_s21  }
  0x25   :  { %s4853_s24 = smov [#allocation7]   ;;  %s4854_s26 = smov [#allocation8]  }
  0x26   :  { %s46_s25 = sshll.u32 %s4853_s24, 4  ;;  %s58_s27 = sshll.u32 %s4854_s26, 4  ;;  %s47_s25 = int_to_ptr.vmem [resolvable:$true] %s46_s25  ;;  %s4930_s27 = int_to_ptr.vmem [resolvable:$true] %s58_s27 }
  0x27   :  { %s4773_s30 = scalar_lea.hbm %s6077_s3, 2304 }
  0x28   :  { %p4774_p2 = scmp.ne.s32.totalorder %s6077_s3, %s4773_s30  ;;  %p4777_p3 = scmp.lt.u32.totalorder %s4773_s30, %s6077_s3 }
  0x2a   :  { %p4779_p4 = pnand %p4777_p3, %p4774_p2 }
  0x2c   :  { %4782 = shalt.err (!%p4779_p4)
}
  0x2d   :  { %s4783_s0 = scalar_lea.vmem %s47_s25, 2304  ;;  %p4788_p6 = scmp.lt.s32.totalorder %s47_s25, %s47_s25 }
  0x2e   :  { %p4784_p5 = scmp.ne.s32.totalorder %s47_s25, %s4783_s0  ;;  %p4789_p7 = scmp.lt.s32.totalorder %s4783_s0, %s4783_s0 }
  0x30   :  { %p4790_p8 = por %p4789_p7, %p4788_p6 }
  0x32   :  { %p4791_p9 = pnand %p4790_p8, %p4784_p5 }
  0x34   :  { %4794 = shalt.err (!%p4791_p9)
}
  0x35   :  { %52 = dma.hbm_to_vmem [thread:$0]  %s6077_s3, 2304, %s47_s25, [#allocation6], %s4848_s7, %s4848_s7, %s4849_s8  }
  0x36   :  { %s4795_s17 = scalar_lea.hbm %s6078_s4, 2304 }
  0x37   :  { %p4796_p10 = scmp.ne.s32.totalorder %s6078_s4, %s4795_s17  ;;  %p4799_p11 = scmp.lt.u32.totalorder %s4795_s17, %s6078_s4 }
  0x39   :  { %p4801_p12 = pnand %p4799_p11, %p4796_p10 }
  0x3b   :  { %4804 = shalt.err (!%p4801_p12)
}
  0x3c   :  { %s4805_s23 = scalar_lea.vmem %s4930_s27, 2304  ;;  %p4810_p0 = scmp.lt.s32.totalorder %s4930_s27, %s4930_s27 }
  0x3d   :  { %p4806_p13 = scmp.ne.s32.totalorder %s4930_s27, %s4805_s23  ;;  %p4811_p1 = scmp.lt.s32.totalorder %s4805_s23, %s4805_s23 }
  0x3f   :  { %p4812_p2 = por %p4811_p1, %p4810_p0 }
  0x41   :  { %p4813_p3 = pnand %p4812_p2, %p4806_p13 }
  0x43   :  { %4816 = shalt.err (!%p4813_p3)
}
  0x44   :  { %64 = dma.hbm_to_vmem [thread:$0]  %s6078_s4, 2304, %s4930_s27, [#allocation9], %s4848_s7, %s4848_s7, %s4849_s8  }
  0x45   :  { %4839 = dma.done.wait [#allocation3], 1024  }
  0x46   :  { %4840 = vsyncadd [#allocation3], 4294966272 }
  0x47   :  { %4841 = dma.done.wait [#allocation6], 2560  }
  0x48   :  { %4842 = vsyncadd [#allocation6], 4294964736 }
  0x49   :  { %4843 = dma.done.wait [#allocation9], 2304  }
  0x4a   :  { %4844 = vsyncadd [#allocation9], 4294964992  ;;  %v4967_v0 = vld [vmem:[#allocation2 + $0x8] sm:$0xff]  ;;  %v4969_v1 = vld [vmem:[#allocation2] sm:$0xff]  ;;  %v4855_v2 = vmov 0.0   ;;  %s4856_s4 = smov 17   ;;  %v215_v5 = vlaneseq }
  0x4b   :  { %341 = vmatprep.mubr.f32.mxu1 %v4855_v2  ;;  %168 = vmatprep.mubr.f32.mxu0 %v4855_v2  ;;  %v86_v3 = vld [vmem:[#allocation2 + $0x18] sm:$0xff]  ;;  %v85_v4 = vld [vmem:[#allocation2 + $0x10] sm:$0xff]  ;;  %s4857_s7 = smov 15   ;;  %v4314_v9 = vld [vmem:[%s6079_s5 + $0x4] ss:$8 sm:$0x3] }
  0x4c   :  { %245 = vrot.lane.b32.xlu1 %v4967_v0, %s4852_s21  ;;  %241 = vrot.lane.b32.xlu0 %v4969_v1, %s4852_s21  ;;  %v225_v6 = vshrl.u32 %v215_v5, 7  ;;  %s4858_s26 = smov 1   ;;  %v4397_v18 = vpack.c.bf16 %v86_v3, %v4967_v0  ;;  %v4399_v19 = vpack.c.bf16 %v85_v4, %v4969_v1  ;;  %s4859_s27 = smov 127   ;;  %vm97_vm0 = vcmask 130048   ;;  %v5033_v20 = vld [vmem:[#allocation5] sm:$0xff]  ;;  %v5040_v21 = vld [vmem:[#allocation5 + $0x8] sm:$0xff] }
  0x4d   :  { %s4860_s28 = smov 113   ;;  %s4861_s29 = smov 112   ;;  %v81_v22 = vld [vmem:[%s6076_s2] sm:$0xff]  ;;  %v82_v23 = vld [vmem:[%s6076_s2 + $0x8] sm:$0xff]  ;;  %v4863_v24 = vmov 0   ;;  %v5070_v25 = vand.u32 127, %v215_v5 }
  0x4e   :  { %v4988_v7 = vsub.s32 1, %v225_v6  ;;  %v4993_v8 = vsub.s32 0, %v225_v6  ;;  %4398 = vmatprep.subr.bf16.mxu0 %v4397_v18  ;;  %s4862_s30 = smov 111   ;;  %4695 = vset.pattern.permute.xlu0 %v4863_v24  ;;  %v4303_v26 = vld [vmem:[%s6079_s5 + $0x1] ss:$8 sm:$0x3] }
  0x4f   :  { %4400 = vmatpush1.bf16.msra.mxu0 %v4399_v19  ;;  %4696 = vset.pattern.permute.xlu1 %v4863_v24  ;;  %vm249_vm1 = vcmp.lt.s32.totalorder %v5070_v25, 16  ;;  %v222_v41 = vld [vmem:[%s6079_s5] ss:$8 sm:$0x3]  ;;  %vm217_vm2 = vcmp.lt.s32.totalorder %v5070_v25, 17  ;;  %vm448_vm3 = vcmp.lt.s32.totalorder %v5070_v25, 15 }
  0x50   :  { %247 = vrot.lane.b32.xlu1 %v86_v3, %s4852_s21  ;;  %243 = vrot.lane.b32.xlu0 %v85_v4, %s4852_s21  ;;  %v4999_v10 = vrot.slane %v4314_v9, %v4988_v7  ;;  %v5002_v11 = vrot.slane %v4314_v9, %v4993_v8  ;;  %v5077_v29 = vrot.slane %v4303_v26, %v4988_v7  ;;  %v239_v48 = vld [vmem:[#allocation7 + $0x10] sm:$0xff]  ;;  %v240_v59 = vld [vmem:[#allocation7 + $0x18] sm:$0xff]  ;;  %vm568_vm4 = vcmp.lt.s32.totalorder %v5070_v25, 1 }
  0x51   :  { %v5080_v30 = vrot.slane %v4303_v26, %v4993_v8  ;;  %v5099_v46 = vrot.slane %v222_v41, %v4993_v8  ;;  %v5102_v47 = vrot.slane %v222_v41, %v4988_v7  ;;  %v4308_v60 = vld [vmem:[%s6079_s5 + $0x2] ss:$8 sm:$0x3]  ;;  %vm795_vm5 = vcmp.lt.s32.totalorder %v5070_v25, 127 }
  0x52   :  { %v5006_v12 = vmul.f32 %v4999_v10, %v4967_v0  ;;  %v5009_v13 = vmul.f32 %v4999_v10, %v86_v3  ;;  %v5016_v14 = vmul.f32 %v5002_v11, %v4969_v1  ;;  %v5019_v15 = vmul.f32 %v5002_v11, %v85_v4  ;;  %4297 = vmatmul.mubr.msk.f32.vlgmr.msra.gmra.mrb[0].mxu0 %vm97_vm0, %v5033_v20 }
  0x53   :  { %174 = vmatprep.mubr.f32.mxu0 %v4855_v2  ;;  %vm915_vm6 = vcmp.lt.s32.totalorder %v5070_v25, 113  ;;  %vm1035_vm7 = vcmp.lt.s32.totalorder %v5070_v25, 112  ;;  %vm1155_vm8 = vcmp.lt.s32.totalorder %v5070_v25, 111 }
  0x54   :  { %209 = vrot.lane.b32.xlu1 %v85_v4, %s4856_s4  ;;  %207 = vrot.lane.b32.xlu0 %v4969_v1, %s4856_s4  ;;  %v4417_v16 = vpack.c.bf16 %v5009_v13, %v5006_v12  ;;  %v4419_v17 = vpack.c.bf16 %v5019_v15, %v5016_v14  ;;  %v678_v14 = vld [vmem:[#allocation7 + $0x40] sm:$0xff] }
  0x56   :  { %4298 = vmatmul.mubr.msk.f32.gmra.mrb[2].mxu0 %vm97_vm0, %v5040_v21 }
  0x57   :  { %1375 = vmatprep.mubr.f32.mxu0 %v4855_v2 }
  0x58   :  { %213 = vrot.lane.b32.xlu1 %v86_v3, %s4856_s4  ;;  %211 = vrot.lane.b32.xlu0 %v4967_v0, %s4856_s4 }
  0x5c   :  { %442 = vrot.lane.b32.xlu1 %v85_v4, %s4857_s7  ;;  %440 = vrot.lane.b32.xlu0 %v4969_v1, %s4857_s7 }
  0x60   :  { %446 = vrot.lane.b32.xlu1 %v86_v3, %s4857_s7  ;;  %444 = vrot.lane.b32.xlu0 %v4967_v0, %s4857_s7 }
  0x64   :  { %562 = vrot.lane.b32.xlu1 %v85_v4, %s4858_s26  ;;  %560 = vrot.lane.b32.xlu0 %v4969_v1, %s4858_s26 }
  0x68   :  { %566 = vrot.lane.b32.xlu1 %v86_v3, %s4858_s26  ;;  %564 = vrot.lane.b32.xlu0 %v4967_v0, %s4858_s26 }
  0x6c   :  { %789 = vrot.lane.b32.xlu1 %v85_v4, %s4859_s27  ;;  %787 = vrot.lane.b32.xlu0 %v4969_v1, %s4859_s27 }
  0x70   :  { %793 = vrot.lane.b32.xlu1 %v86_v3, %s4859_s27  ;;  %791 = vrot.lane.b32.xlu0 %v4967_v0, %s4859_s27 }
  0x74   :  { %909 = vrot.lane.b32.xlu1 %v85_v4, %s4860_s28  ;;  %907 = vrot.lane.b32.xlu0 %v4969_v1, %s4860_s28 }
  0x78   :  { %913 = vrot.lane.b32.xlu1 %v86_v3, %s4860_s28  ;;  %911 = vrot.lane.b32.xlu0 %v4967_v0, %s4860_s28 }
  0x7c   :  { %1029 = vrot.lane.b32.xlu1 %v85_v4, %s4861_s29  ;;  %1027 = vrot.lane.b32.xlu0 %v4969_v1, %s4861_s29 }
  0x80   :  { %1033 = vrot.lane.b32.xlu1 %v86_v3, %s4861_s29  ;;  %1031 = vrot.lane.b32.xlu0 %v4967_v0, %s4861_s29 }
  0x84   :  { %1149 = vrot.lane.b32.xlu1 %v85_v4, %s4862_s30  ;;  %1147 = vrot.lane.b32.xlu0 %v4969_v1, %s4862_s30  ;;  %v5124_v1 = vrot.slane %v4308_v60, %v4993_v8  ;;  %v205_v4 = vld [vmem:[#allocation7] sm:$0xff] }
  0x88   :  { %1153 = vrot.lane.b32.xlu1 %v86_v3, %s4862_s30  ;;  %1151 = vrot.lane.b32.xlu0 %v4967_v0, %s4862_s30  ;;  %v5127_v3 = vrot.slane %v4308_v60, %v4988_v7 }
  0x8c   :  { %89 = vperm.xlu0 %4695, %v81_v22   ;;  %94 = vperm.xlu1 %4696, %v82_v23  }
  0xbe   :  { %v246_v27 = vpop.permute.xlu1 %245  ;;  %v242_v28 = vpop.permute.xlu0 %241 }
  0xbf   :  { %v252_v31 = vsel %vm249_vm1, %v246_v27, %v242_v28  ;;  %v250_v32 = vsel %vm249_vm1, %v242_v28, %v246_v27  ;;  %v206_v28 = vld [vmem:[#allocation7 + $0x8] sm:$0xff] }
  0xc0   :  { %v268_v37 = vmul.f32 %v5077_v29, %v250_v32  ;;  %v267_v39 = vmul.f32 %v5080_v30, %v252_v31  ;;  %v4311_v31 = vld [vmem:[%s6079_s5 + $0x3] ss:$8 sm:$0x3] }
  0xc2   :  { %v248_v33 = vpop.permute.xlu1 %247  ;;  %v244_v34 = vpop.permute.xlu0 %243 }
  0xc3   :  { %v253_v35 = vsel %vm249_vm1, %v248_v33, %v244_v34  ;;  %v251_v36 = vsel %vm249_vm1, %v244_v34, %v248_v33 }
  0xc4   :  { %v270_v38 = vmul.f32 %v5077_v29, %v251_v36  ;;  %v269_v40 = vmul.f32 %v5080_v30, %v253_v35  ;;  %v5150_v36 = vrot.slane %v4311_v31, %v4993_v8 }
  0xc6   :  { %v210_v42 = vpop.permute.xlu1 %209  ;;  %v208_v43 = vpop.permute.xlu0 %207  ;;  %v4401_v44 = vpack.c.bf16 %v270_v38, %v268_v37  ;;  %v4403_v45 = vpack.c.bf16 %v269_v40, %v267_v39  ;;  %v5153_v37 = vrot.slane %v4311_v31, %v4988_v7  ;;  %v438_v38 = vld [vmem:[#allocation7 + $0x20] sm:$0xff] }
  0xc8   :  { %4402 = vmatprep.subr.bf16.mxu1 %v4401_v44 }
  0xc9   :  { %4404 = vmatpush1.bf16.msra.mxu1 %v4403_v45 }
  0xca   :  { %v214_v49 = vpop.permute.xlu1 %213  ;;  %v212_v50 = vpop.permute.xlu0 %211 }
  0xcb   :  { %v219_v51 = vsel %vm217_vm2, %v210_v42, %v214_v49  ;;  %v221_v52 = vsel %vm217_vm2, %v214_v49, %v210_v42  ;;  %v218_v53 = vsel %vm217_vm2, %v208_v43, %v212_v50  ;;  %v220_v54 = vsel %vm217_vm2, %v212_v50, %v208_v43 }
  0xcc   :  { %v236_v55 = vmul.f32 %v5099_v46, %v221_v52  ;;  %v237_v56 = vmul.f32 %v5102_v47, %v219_v51  ;;  %v234_v57 = vmul.f32 %v5099_v46, %v220_v54  ;;  %v235_v58 = vmul.f32 %v5102_v47, %v218_v53  ;;  %4304 = vmatmul.mubr.msk.f32.vlgmr.msra.gmra.mrb[0].mxu1 %vm97_vm0, %v239_v48  ;;  %v439_v51 = vld [vmem:[#allocation7 + $0x28] sm:$0xff]  ;;  %v4317_v52 = vld [vmem:[%s6079_s5 + $0x5] ss:$8 sm:$0x3] }
  0xcd   :  { %347 = vmatprep.mubr.f32.mxu1 %v4855_v2 }
  0xce   :  { %v4407_v61 = vpack.c.bf16 %v236_v55, %v234_v57  ;;  %v443_v62 = vpop.permute.xlu1 %442  ;;  %v441_v63 = vpop.permute.xlu0 %440  ;;  %v4405_v0 = vpack.c.bf16 %v237_v56, %v235_v58  ;;  %v5176_v57 = vrot.slane %v4317_v52, %v4988_v7  ;;  %v558_v58 = vld [vmem:[#allocation7 + $0x30] sm:$0xff] }
  0xd0   :  { %4305 = vmatmul.mubr.msk.f32.gmra.mrb[2].mxu1 %vm97_vm0, %v240_v59  ;;  %4406 = vmatprep.subr.bf16.mxu1 %v4405_v0  ;;  %v5180_v59 = vrot.slane %v4317_v52, %v4993_v8 }
  0xd1   :  { %4408 = vmatpush1.bf16.msra.mxu1 %v4407_v61  ;;  %424 = vmatprep.mubr.f32.mxu1 %v4855_v2 }
  0xd2   :  { %v447_v5 = vpop.permute.xlu1 %446  ;;  %v445_v6 = vpop.permute.xlu0 %444 }
  0xd3   :  { %v450_v9 = vsel %vm448_vm3, %v443_v62, %v447_v5  ;;  %v452_v18 = vsel %vm448_vm3, %v447_v5, %v443_v62  ;;  %v449_v19 = vsel %vm448_vm3, %v441_v63, %v445_v6  ;;  %v451_v22 = vsel %vm448_vm3, %v445_v6, %v441_v63 }
  0xd4   :  { %v468_v23 = vmul.f32 %v5124_v1, %v452_v18  ;;  %v469_v24 = vmul.f32 %v5127_v3, %v450_v9  ;;  %v466_v26 = vmul.f32 %v5124_v1, %v451_v22  ;;  %v467_v27 = vmul.f32 %v5127_v3, %v449_v19  ;;  %4306 = vmatmul.mubr.msk.f32.vlgmr.msra.gmra.mrb[0].mxu1 %vm97_vm0, %v205_v4  ;;  %v4320_v9 = vld [vmem:[%s6079_s5 + $0x6] ss:$8 sm:$0x3] }
  0xd5   :  { %430 = vmatprep.mubr.f32.mxu1 %v4855_v2  ;;  %v5212_v15 = vrot.slane %v4320_v9, %v4993_v8 }
  0xd6   :  { %v4411_v32 = vpack.c.bf16 %v468_v23, %v466_v26  ;;  %v563_v33 = vpop.permute.xlu1 %562  ;;  %v561_v34 = vpop.permute.xlu0 %560  ;;  %v4409_v35 = vpack.c.bf16 %v469_v24, %v467_v27  ;;  %v5208_v23 = vrot.slane %v4320_v9, %v4988_v7 }
  0xd8   :  { %4307 = vmatmul.mubr.msk.f32.gmra.mrb[2].mxu1 %vm97_vm0, %v206_v28  ;;  %4410 = vmatprep.subr.bf16.mxu1 %v4409_v35 }
  0xd9   :  { %4412 = vmatpush1.bf16.msra.mxu1 %v4411_v32  ;;  %540 = vmatprep.mubr.f32.mxu1 %v4855_v2 }
  0xda   :  { %v567_v39 = vpop.permute.xlu1 %566  ;;  %v565_v40 = vpop.permute.xlu0 %564 }
  0xdb   :  { %v570_v41 = vsel %vm568_vm4, %v563_v33, %v567_v39  ;;  %v572_v42 = vsel %vm568_vm4, %v567_v39, %v563_v33  ;;  %v569_v43 = vsel %vm568_vm4, %v561_v34, %v565_v40  ;;  %v571_v44 = vsel %vm568_vm4, %v565_v40, %v561_v34  ;;  %v679_v39 = vld [vmem:[#allocation7 + $0x48] sm:$0xff]  ;;  %v4323_v40 = vld [vmem:[%s6079_s5 + $0x7] ss:$8 sm:$0x3] }
  0xdc   :  { %v588_v45 = vmul.f32 %v5150_v36, %v572_v42  ;;  %v589_v48 = vmul.f32 %v5153_v37, %v570_v41  ;;  %v586_v49 = vmul.f32 %v5150_v36, %v571_v44  ;;  %v587_v50 = vmul.f32 %v5153_v37, %v569_v43  ;;  %4309 = vmatmul.mubr.msk.f32.vlgmr.msra.gmra.mrb[0].mxu1 %vm97_vm0, %v438_v38 }
  0xdd   :  { %546 = vmatprep.mubr.f32.mxu1 %v4855_v2  ;;  %v5234_v44 = vrot.slane %v4323_v40, %v4988_v7 }
  0xde   :  { %v4415_v53 = vpack.c.bf16 %v588_v45, %v586_v49  ;;  %v4413_v54 = vpack.c.bf16 %v589_v48, %v587_v50  ;;  %v790_v55 = vpop.permute.xlu1 %789  ;;  %v788_v56 = vpop.permute.xlu0 %787  ;;  %v785_v48 = vld [vmem:[#allocation7 + $0x50] sm:$0xff]  ;;  %v5238_v49 = vrot.slane %v4323_v40, %v4993_v8  ;;  %v1026_v40 = vld [vmem:[#allocation7 + $0x78] sm:$0xff] }
  0xe0   :  { %4310 = vmatmul.mubr.msk.f32.gmra.mrb[2].mxu1 %vm97_vm0, %v439_v51  ;;  %4414 = vmatprep.subr.bf16.mxu1 %v4413_v54 }
  0xe1   :  { %4416 = vmatpush1.bf16.msra.mxu1 %v4415_v53  ;;  %660 = vmatprep.mubr.f32.mxu1 %v4855_v2 }
  0xe2   :  { %v794_v60 = vpop.permute.xlu1 %793  ;;  %v792_v61 = vpop.permute.xlu0 %791  ;;  %4418 = vmatprep.subr.bf16.mxu1 %v4417_v16  ;;  %v559_v16 = vld [vmem:[#allocation7 + $0x38] sm:$0xff] }
  0xe3   :  { %v797_v62 = vsel %vm795_vm5, %v790_v55, %v794_v60  ;;  %v799_v63 = vsel %vm795_vm5, %v794_v60, %v790_v55  ;;  %v796_v0 = vsel %vm795_vm5, %v788_v56, %v792_v61  ;;  %v798_v4 = vsel %vm795_vm5, %v792_v61, %v788_v56 }
  0xe4   :  { %4312 = vmatmul.mubr.msk.f32.vlgmr.msra.gmra.mrb[0].mxu1 %vm97_vm0, %v558_v58  ;;  %v816_v5 = vmul.f32 %v5176_v57, %v799_v63  ;;  %v814_v6 = vmul.f32 %v5176_v57, %v798_v4  ;;  %v815_v12 = vmul.f32 %v5180_v59, %v797_v62  ;;  %v813_v13 = vmul.f32 %v5180_v59, %v796_v0  ;;  %v786_v62 = vld [vmem:[#allocation7 + $0x58] sm:$0xff]  ;;  %v4326_v63 = vld [vmem:[%s6079_s5 + $0x10] ss:$8 sm:$0x3] }
  0xe5   :  { %666 = vmatprep.mubr.f32.mxu1 %v4855_v2  ;;  %4420 = vmatpush1.bf16.msra.mxu1 %v4419_v17 }
  0xe6   :  { %v910_v18 = vpop.permute.xlu1 %909  ;;  %v908_v19 = vpop.permute.xlu0 %907  ;;  %v4421_v22 = vpack.c.bf16 %v816_v5, %v814_v6  ;;  %v4423_v24 = vpack.c.bf16 %v815_v12, %v813_v13  ;;  %v5260_v6 = vrot.slane %v4326_v63, %v4988_v7  ;;  %v905_v13 = vld [vmem:[#allocation7 + $0x60] sm:$0xff] }
  0xe8   :  { %4313 = vmatmul.mubr.msk.f32.gmra.mrb[2].mxu1 %vm97_vm0, %v559_v16  ;;  %4422 = vmatprep.subr.bf16.mxu1 %v4421_v22  ;;  %v5264_v16 = vrot.slane %v4326_v63, %v4993_v8 }
  0xe9   :  { %767 = vmatprep.mubr.f32.mxu1 %v4855_v2 }
  0xea   :  { %v914_v17 = vpop.permute.xlu1 %913  ;;  %v912_v26 = vpop.permute.xlu0 %911 }
  0xeb   :  { %v917_v27 = vsel %vm915_vm6, %v910_v18, %v914_v17  ;;  %v919_v28 = vsel %vm915_vm6, %v914_v17, %v910_v18  ;;  %v916_v31 = vsel %vm915_vm6, %v908_v19, %v912_v26  ;;  %v918_v32 = vsel %vm915_vm6, %v912_v26, %v908_v19 }
  0xec   :  { %4315 = vmatmul.mubr.msk.f32.vlgmr.msra.gmra.mrb[0].mxu1 %vm97_vm0, %v678_v14  ;;  %v936_v33 = vmul.f32 %v5208_v23, %v919_v28  ;;  %v934_v34 = vmul.f32 %v5208_v23, %v918_v32  ;;  %v935_v35 = vmul.f32 %v5212_v15, %v917_v27  ;;  %v933_v38 = vmul.f32 %v5212_v15, %v916_v31  ;;  %v906_v31 = vld [vmem:[#allocation7 + $0x68] sm:$0xff] }
  0xed   :  { %4424 = vmatpush1.bf16.msra.mxu1 %v4423_v24  ;;  %773 = vmatprep.mubr.f32.mxu1 %v4855_v2 }
  0xee   :  { %v1030_v41 = vpop.permute.xlu1 %1029  ;;  %v1028_v42 = vpop.permute.xlu0 %1027  ;;  %v4425_v43 = vpack.c.bf16 %v936_v33, %v934_v34  ;;  %v4427_v45 = vpack.c.bf16 %v935_v35, %v933_v38  ;;  %v5280_v33 = vld [vmem:[#allocation2 + $0x28] sm:$0xff]  ;;  %v5282_v34 = vld [vmem:[#allocation2 + $0x38] sm:$0xff]  ;;  %v1025_v38 = vld [vmem:[#allocation7 + $0x70] sm:$0xff] }
  0xf0   :  { %4316 = vmatmul.mubr.msk.f32.gmra.mrb[2].mxu1 %vm97_vm0, %v679_v39  ;;  %4426 = vmatprep.subr.bf16.mxu1 %v4425_v43  ;;  %v4473_v39 = vpack.c.bf16 %v5282_v34, %v5280_v33  ;;  %v1145_v43 = vld [vmem:[#allocation7 + $0x80] sm:$0xff] }
  0xf1   :  { %887 = vmatprep.mubr.f32.mxu1 %v4855_v2 }
  0xf2   :  { %v1034_v50 = vpop.permute.xlu1 %1033  ;;  %v1032_v51 = vpop.permute.xlu0 %1031 }
  0xf3   :  { %v1037_v52 = vsel %vm1035_vm7, %v1030_v41, %v1034_v50  ;;  %v1039_v53 = vsel %vm1035_vm7, %v1034_v50, %v1030_v41  ;;  %v1036_v54 = vsel %vm1035_vm7, %v1028_v42, %v1032_v51  ;;  %v1038_v55 = vsel %vm1035_vm7, %v1032_v51, %v1028_v42  ;;  %v5290_v41 = vld [vmem:[#allocation2 + $0x20] sm:$0xff]  ;;  %v5292_v42 = vld [vmem:[#allocation2 + $0x30] sm:$0xff] }
  0xf4   :  { %4318 = vmatmul.mubr.msk.f32.vlgmr.msra.gmra.mrb[0].mxu1 %vm97_vm0, %v785_v48  ;;  %v1056_v56 = vmul.f32 %v5234_v44, %v1039_v53  ;;  %v1054_v58 = vmul.f32 %v5234_v44, %v1038_v55  ;;  %v1055_v60 = vmul.f32 %v5238_v49, %v1037_v52  ;;  %v1053_v61 = vmul.f32 %v5238_v49, %v1036_v54  ;;  %v1146_v48 = vld [vmem:[#allocation7 + $0x88] sm:$0xff] }
  0xf5   :  { %4428 = vmatpush1.bf16.msra.mxu1 %v4427_v45  ;;  %893 = vmatprep.mubr.f32.mxu1 %v4855_v2  ;;  %v4475_v45 = vpack.c.bf16 %v5292_v42, %v5290_v41 }
  0xf6   :  { %v1150_v0 = vpop.permute.xlu1 %1149  ;;  %v1148_v4 = vpop.permute.xlu0 %1147  ;;  %v4429_v5 = vpack.c.bf16 %v1056_v56, %v1054_v58  ;;  %v4431_v12 = vpack.c.bf16 %v1055_v60, %v1053_v61 }
  0xf8   :  { %4319 = vmatmul.mubr.msk.f32.gmra.mrb[2].mxu1 %vm97_vm0, %v786_v62  ;;  %4430 = vmatprep.subr.bf16.mxu1 %v4429_v5 }
  0xf9   :  { %1007 = vmatprep.mubr.f32.mxu1 %v4855_v2 }
  0xfa   :  { %v1154_v9 = vpop.permute.xlu1 %1153  ;;  %v1152_v18 = vpop.permute.xlu0 %1151 }
  0xfb   :  { %v1157_v19 = vsel %vm1155_vm8, %v1150_v0, %v1154_v9  ;;  %v1159_v22 = vsel %vm1155_vm8, %v1154_v9, %v1150_v0  ;;  %v1156_v24 = vsel %vm1155_vm8, %v1148_v4, %v1152_v18  ;;  %v1158_v14 = vsel %vm1155_vm8, %v1152_v18, %v1148_v4 }
  0xfc   :  { %4321 = vmatmul.mubr.msk.f32.vlgmr.msra.gmra.mrb[0].mxu1 %vm97_vm0, %v905_v13  ;;  %v1176_v17 = vmul.f32 %v5260_v6, %v1159_v22  ;;  %v1174_v26 = vmul.f32 %v5260_v6, %v1158_v14  ;;  %v1175_v27 = vmul.f32 %v5264_v16, %v1157_v19  ;;  %v1173_v28 = vmul.f32 %v5264_v16, %v1156_v24 }
  0xfd   :  { %4432 = vmatpush1.bf16.msra.mxu1 %v4431_v12  ;;  %1013 = vmatprep.mubr.f32.mxu1 %v4855_v2 }
  0xfe   :  { %v4433_v32 = vpack.c.bf16 %v1176_v17, %v1174_v26  ;;  %v4435_v35 = vpack.c.bf16 %v1175_v27, %v1173_v28 }
 0x100   :  { %4322 = vmatmul.mubr.msk.f32.gmra.mrb[2].mxu1 %vm97_vm0, %v906_v31  ;;  %4434 = vmatprep.subr.bf16.mxu1 %v4433_v32 }
 0x101   :  { %1127 = vmatprep.mubr.f32.mxu1 %v4855_v2 }
 0x104   :  { %4324 = vmatmul.mubr.msk.f32.vlgmr.msra.gmra.mrb[0].mxu1 %vm97_vm0, %v1025_v38 }
 0x105   :  { %4436 = vmatpush1.bf16.msra.mxu1 %v4435_v35  ;;  %1133 = vmatprep.mubr.f32.mxu1 %v4855_v2 }
 0x106   :  { %4474 = vmatprep.subr.bf16.mxu1 %v4473_v39 }
 0x108   :  { %4325 = vmatmul.mubr.msk.f32.gmra.mrb[2].mxu1 %vm97_vm0, %v1026_v40 }
 0x109   :  { %1247 = vmatprep.mubr.f32.mxu1 %v4855_v2 }
 0x10b   :  { %v5308_v54 = vpop.permute.xlu0 %89  ;;  %v5312_v58 = vpop.permute.xlu1 %94 }
 0x10c   :  { %4327 = vmatmul.mubr.msk.f32.vlgmr.msra.gmra.mrb[0].mxu1 %vm97_vm0, %v1145_v43 }
 0x10d   :  { %1253 = vmatprep.mubr.f32.mxu1 %v4855_v2  ;;  %4476 = vmatpush1.bf16.msra.mxu1 %v4475_v45 }
 0x110   :  { %4328 = vmatmul.mubr.msk.f32.gmra.mrb[2].mxu1 %vm97_vm0, %v1146_v48 }
 0x111   :  { %2274 = vmatprep.mubr.f32.mxu1 %v4855_v2 }
 0x114   :  { %4347 = vmatmul.mubr.msk.f32.vlgmr.msra.gmra.mrb[4].mxu1 %vm97_vm0, %v5033_v20 }
 0x115   :  { %2280 = vmatprep.mubr.f32.mxu1 %v4855_v2 }
 0x118   :  { %4348 = vmatmul.mubr.msk.f32.gmra.mrb[6].mxu1 %vm97_vm0, %v5040_v21 }
 0x119   :  { %3454 = vmatprep.mubr.f32.mxu1 %v4855_v2 }
 0x125   :  { %v170_v50 = vpop.f32.mrb[0].mxu0 }
 0x126   :  { %v172_v51 = vpop.f32.mrb[1].mxu0  ;;  %v171_v55 = vadd.f32 %v170_v50, %v5308_v54 }
 0x127   :  { %v173_v56 = vadd.f32 %v172_v51, %v5308_v54 }
 0x128   :  { %v4299_v20 = vmul.f32 -1.442695, %v171_v55 }
 0x129   :  { %v176_v52 = vpop.f32.mrb[2].mxu0  ;;  %v4300_v61 = vmul.f32 -1.442695, %v173_v56 }
 0x12a   :  { %v178_v53 = vpop.f32.mrb[3].mxu0  ;;  %v177_v60 = vadd.f32 %v176_v52, %v5312_v58  ;;  %4697 = vpow2.f32 %v4299_v20 }
 0x12b   :  { %v179_v21 = vadd.f32 %v178_v53, %v5312_v58  ;;  %4699 = vpow2.f32 %v4300_v61 }
 0x12c   :  { %v4301_v62 = vmul.f32 -1.442695, %v177_v60 }
 0x12d   :  { %v4302_v63 = vmul.f32 -1.442695, %v179_v21 }
 0x12e   :  { %4701 = vpow2.f32 %v4301_v62 }
 0x12f   :  { %4703 = vpow2.f32 %v4302_v63 }
 0x134   :  { %v4698_v0 = vpop.eup %4697 }
 0x135   :  { %v4700_v4 = vpop.eup %4699  ;;  %v193_v5 = vadd.f32 1.0, %v4698_v0 }
 0x136   :  { %v194_v13 = vadd.f32 1.0, %v4700_v4 }
 0x137   :  { %4705 = vrcp.f32 %v193_v5 }
 0x138   :  { %v4702_v12 = vpop.eup %4701  ;;  %4707 = vrcp.f32 %v194_v13 }
 0x139   :  { %v4704_v9 = vpop.eup %4703  ;;  %v195_v18 = vadd.f32 1.0, %v4702_v12 }
 0x13a   :  { %v196_v19 = vadd.f32 1.0, %v4704_v9 }
 0x13b   :  { %4709 = vrcp.f32 %v195_v18 }
 0x13c   :  { %4711 = vrcp.f32 %v196_v19 }
 0x141   :  { %v4706_v22 = vpop.eup %4705 }
 0x142   :  { %v4708_v24 = vpop.eup %4707 }
 0x145   :  { %v4710_v27 = vpop.eup %4709 }
 0x146   :  { %v4712_v31 = vpop.eup %4711 }
 0x1df   :  { %v1249_v14 = vpop.f32.mrb[0].mxu1 }
 0x1e0   :  { %v1264_v17 = vmul.f32 %v4706_v22, %v1249_v14  ;;  %v1251_v26 = vpop.f32.mrb[1].mxu1 }
 0x1e1   :  { %v1265_v28 = vmul.f32 %v4708_v24, %v1251_v26 }
 0x1e2   :  { %1289 = vrot.lane.b32.xlu1 %v1264_v17, %s4852_s21  ;;  %v5320_v40 = vmul.f32 %v1264_v17, %v5002_v11 }
 0x1e3   :  { %v1255_v32 = vpop.f32.mrb[2].mxu1  ;;  %v5328_v48 = vmul.f32 %v1265_v28, %v4999_v10 }
 0x1e4   :  { %v1266_v35 = vmul.f32 %v4710_v27, %v1255_v32  ;;  %v1257_v38 = vpop.f32.mrb[3].mxu1 }
 0x1e5   :  { %v1267_v39 = vmul.f32 %v4712_v31, %v1257_v38  ;;  %v5465_v38 = vld [vmem:[#allocation8 + $0x18] sm:$0xff] }
 0x1e6   :  { %1291 = vrot.lane.b32.xlu0 %v1266_v35, %s4852_s21  ;;  %1293 = vrot.lane.b32.xlu1 %v1265_v28, %s4852_s21  ;;  %v5323_v43 = vmul.f32 %v1266_v35, %v5002_v11 }
 0x1e7   :  { %v5325_v45 = vpop.f32.mrb[4].mxu1  ;;  %v5331_v50 = vmul.f32 %v1267_v39, %v4999_v10 }
 0x1e8   :  { %v5333_v51 = vpop.f32.mrb[5].mxu1  ;;  %v4455_v52 = vpack.c.bf16 %v5323_v43, %v5320_v40  ;;  %v5544_v43 = vld [vmem:[#allocation8 + $0x40] sm:$0xff] }
 0x1e9   :  { %v4453_v53 = vpack.c.bf16 %v5331_v50, %v5328_v48  ;;  %v5533_v48 = vld [vmem:[#allocation8 + $0x38] sm:$0xff] }
 0x1ea   :  { %1295 = vrot.lane.b32.xlu0 %v1267_v39, %s4852_s21  ;;  %1270 = vrot.lane.b32.xlu1 %v1264_v17, %s4856_s4 }
 0x1eb   :  { %v5341_v11 = vpop.f32.mrb[6].mxu1 }
 0x1ec   :  { %v5343_v55 = vpop.f32.mrb[7].mxu1 }
 0x1ee   :  { %1272 = vrot.lane.b32.xlu0 %v1266_v35, %s4856_s4  ;;  %1274 = vrot.lane.b32.xlu1 %v1265_v28, %s4856_s4 }
 0x1f2   :  { %1276 = vrot.lane.b32.xlu0 %v1267_v39, %s4856_s4  ;;  %1474 = vrot.lane.b32.xlu1 %v1264_v17, %s4857_s7 }
 0x1f6   :  { %1476 = vrot.lane.b32.xlu0 %v1266_v35, %s4857_s7  ;;  %1478 = vrot.lane.b32.xlu1 %v1265_v28, %s4857_s7 }
 0x1fa   :  { %1480 = vrot.lane.b32.xlu0 %v1267_v39, %s4857_s7  ;;  %1580 = vrot.lane.b32.xlu1 %v1264_v17, %s4858_s26 }
 0x1fe   :  { %1582 = vrot.lane.b32.xlu0 %v1266_v35, %s4858_s26  ;;  %1584 = vrot.lane.b32.xlu1 %v1265_v28, %s4858_s26 }
 0x202   :  { %1586 = vrot.lane.b32.xlu0 %v1267_v39, %s4858_s26  ;;  %1780 = vrot.lane.b32.xlu1 %v1264_v17, %s4859_s27 }
 0x206   :  { %1782 = vrot.lane.b32.xlu0 %v1266_v35, %s4859_s27  ;;  %1784 = vrot.lane.b32.xlu1 %v1265_v28, %s4859_s27 }
 0x20a   :  { %1786 = vrot.lane.b32.xlu0 %v1267_v39, %s4859_s27  ;;  %1886 = vrot.lane.b32.xlu1 %v1264_v17, %s4860_s28 }
 0x20e   :  { %1888 = vrot.lane.b32.xlu0 %v1266_v35, %s4860_s28  ;;  %1890 = vrot.lane.b32.xlu1 %v1265_v28, %s4860_s28 }
 0x212   :  { %1892 = vrot.lane.b32.xlu0 %v1267_v39, %s4860_s28  ;;  %1992 = vrot.lane.b32.xlu1 %v1264_v17, %s4861_s29 }
 0x216   :  { %1994 = vrot.lane.b32.xlu0 %v1266_v35, %s4861_s29  ;;  %1996 = vrot.lane.b32.xlu1 %v1265_v28, %s4861_s29 }
 0x21a   :  { %1998 = vrot.lane.b32.xlu0 %v1267_v39, %s4861_s29  ;;  %2098 = vrot.lane.b32.xlu1 %v1264_v17, %s4862_s30 }
 0x21e   :  { %2100 = vrot.lane.b32.xlu0 %v1266_v35, %s4862_s30  ;;  %2102 = vrot.lane.b32.xlu1 %v1265_v28, %s4862_s30 }
 0x222   :  { %2104 = vrot.lane.b32.xlu0 %v1267_v39, %s4862_s30  ;;  %2343 = vrot.lane.b32.xlu1 %v5290_v41, %s4852_s21 }
 0x226   :  { %2345 = vrot.lane.b32.xlu0 %v5292_v42, %s4852_s21  ;;  %2347 = vrot.lane.b32.xlu1 %v5280_v33, %s4852_s21 }
 0x22a   :  { %2349 = vrot.lane.b32.xlu0 %v5282_v34, %s4852_s21  ;;  %2313 = vrot.lane.b32.xlu1 %v5290_v41, %s4856_s4 }
 0x22e   :  { %2315 = vrot.lane.b32.xlu0 %v5292_v42, %s4856_s4  ;;  %2317 = vrot.lane.b32.xlu1 %v5280_v33, %s4856_s4 }
 0x232   :  { %2319 = vrot.lane.b32.xlu0 %v5282_v34, %s4856_s4  ;;  %2539 = vrot.lane.b32.xlu1 %v5290_v41, %s4857_s7 }
 0x236   :  { %2541 = vrot.lane.b32.xlu0 %v5292_v42, %s4857_s7  ;;  %2543 = vrot.lane.b32.xlu1 %v5280_v33, %s4857_s7 }
 0x23a   :  { %2545 = vrot.lane.b32.xlu0 %v5282_v34, %s4857_s7  ;;  %2656 = vrot.lane.b32.xlu1 %v5290_v41, %s4858_s26 }
 0x23e   :  { %2658 = vrot.lane.b32.xlu0 %v5292_v42, %s4858_s26  ;;  %2660 = vrot.lane.b32.xlu1 %v5280_v33, %s4858_s26 }
 0x242   :  { %2662 = vrot.lane.b32.xlu0 %v5282_v34, %s4858_s26  ;;  %2878 = vrot.lane.b32.xlu1 %v5290_v41, %s4859_s27 }
 0x246   :  { %2880 = vrot.lane.b32.xlu0 %v5292_v42, %s4859_s27  ;;  %2882 = vrot.lane.b32.xlu1 %v5280_v33, %s4859_s27 }
 0x24a   :  { %2884 = vrot.lane.b32.xlu0 %v5282_v34, %s4859_s27  ;;  %2995 = vrot.lane.b32.xlu1 %v5290_v41, %s4860_s28 }
 0x24e   :  { %2997 = vrot.lane.b32.xlu0 %v5292_v42, %s4860_s28  ;;  %2999 = vrot.lane.b32.xlu1 %v5280_v33, %s4860_s28 }
 0x252   :  { %3001 = vrot.lane.b32.xlu0 %v5282_v34, %s4860_s28  ;;  %3112 = vrot.lane.b32.xlu1 %v5290_v41, %s4861_s29 }
 0x254   :  { %v1290_v10 = vpop.permute.xlu1 %1289 }
 0x256   :  { %3114 = vrot.lane.b32.xlu0 %v5292_v42, %s4861_s29  ;;  %3116 = vrot.lane.b32.xlu1 %v5280_v33, %s4861_s29 }
 0x258   :  { %v1292_v56 = vpop.permute.xlu0 %1291  ;;  %v1294_v20 = vpop.permute.xlu1 %1293 }
 0x259   :  { %v1299_v60 = vsel %vm249_vm1, %v1294_v20, %v1290_v10  ;;  %v1297_v61 = vsel %vm249_vm1, %v1290_v10, %v1294_v20 }
 0x25a   :  { %3118 = vrot.lane.b32.xlu0 %v5282_v34, %s4861_s29  ;;  %3229 = vrot.lane.b32.xlu1 %v5290_v41, %s4862_s30  ;;  %v1301_v63 = vmul.f32 %v1299_v60, %v5080_v30  ;;  %v1302_v5 = vmul.f32 %v1297_v61, %v5077_v29  ;;  %v5474_v60 = vld [vmem:[#allocation8] sm:$0xff] }
 0x25c   :  { %v1296_v21 = vpop.permute.xlu0 %1295  ;;  %v1271_v62 = vpop.permute.xlu1 %1270 }
 0x25d   :  { %v1298_v0 = vsel %vm249_vm1, %v1292_v56, %v1296_v21  ;;  %v1300_v4 = vsel %vm249_vm1, %v1296_v21, %v1292_v56 }
 0x25e   :  { %v1303_v12 = vmul.f32 %v1300_v4, %v5080_v30  ;;  %v1304_v13 = vmul.f32 %v1298_v0, %v5077_v29  ;;  %3231 = vrot.lane.b32.xlu0 %v5292_v42, %s4862_s30  ;;  %3233 = vrot.lane.b32.xlu1 %v5280_v33, %s4862_s30  ;;  %v5452_v30 = vld [vmem:[#allocation8 + $0x10] sm:$0xff] }
 0x260   :  { %v4439_v9 = vpack.c.bf16 %v1303_v12, %v1301_v63  ;;  %v1273_v18 = vpop.permute.xlu0 %1272  ;;  %v1275_v19 = vpop.permute.xlu1 %1274  ;;  %v4437_v22 = vpack.c.bf16 %v1304_v13, %v1302_v5  ;;  %v5487_v13 = vld [vmem:[#allocation8 + $0x8] sm:$0xff] }
 0x261   :  { %v1278_v24 = vsel %vm217_vm2, %v1271_v62, %v1275_v19  ;;  %v1280_v29 = vsel %vm217_vm2, %v1275_v19, %v1271_v62 }
 0x262   :  { %4438 = vmatprep.subr.bf16.mxu0 %v4437_v22  ;;  %3235 = vrot.lane.b32.xlu0 %v5282_v34, %s4862_s30  ;;  %v1282_v28 = vmul.f32 %v1280_v29, %v5099_v46  ;;  %v1283_v31 = vmul.f32 %v1278_v24, %v5102_v47  ;;  %v5496_v24 = vld [vmem:[#allocation8 + $0x20] sm:$0xff] }
 0x263   :  { %4440 = vmatpush1.bf16.msra.mxu0 %v4439_v9 }
 0x264   :  { %v1277_v14 = vpop.permute.xlu0 %1276  ;;  %v1475_v17 = vpop.permute.xlu1 %1474 }
 0x265   :  { %v1279_v26 = vsel %vm217_vm2, %v1273_v18, %v1277_v14  ;;  %v1281_v27 = vsel %vm217_vm2, %v1277_v14, %v1273_v18 }
 0x266   :  { %v1284_v32 = vmul.f32 %v1281_v27, %v5099_v46  ;;  %v1285_v35 = vmul.f32 %v1279_v26, %v5102_v47  ;;  %4329 = vmatmul.mubr.msk.f32.vlgmr.msra.gmra.mrb[4].mxu0 %vm97_vm0, %v5452_v30 }
 0x267   :  { %1381 = vmatprep.mubr.f32.mxu0 %v4855_v2 }
 0x268   :  { %v4443_v39 = vpack.c.bf16 %v1284_v32, %v1282_v28  ;;  %v1477_v10 = vpop.permute.xlu0 %1476  ;;  %v1479_v56 = vpop.permute.xlu1 %1478  ;;  %v4441_v20 = vpack.c.bf16 %v1285_v35, %v1283_v31  ;;  %v5509_v35 = vld [vmem:[#allocation8 + $0x28] sm:$0xff] }
 0x269   :  { %v1482_v46 = vsel %vm448_vm3, %v1475_v17, %v1479_v56  ;;  %v1484_v47 = vsel %vm448_vm3, %v1479_v56, %v1475_v17 }
 0x26a   :  { %4330 = vmatmul.mubr.msk.f32.gmra.mrb[6].mxu0 %vm97_vm0, %v5465_v38  ;;  %4442 = vmatprep.subr.bf16.mxu0 %v4441_v20  ;;  %v1486_v0 = vmul.f32 %v1484_v47, %v5124_v1  ;;  %v1487_v4 = vmul.f32 %v1482_v46, %v5127_v3 }
 0x26b   :  { %4444 = vmatpush1.bf16.msra.mxu0 %v4443_v39  ;;  %1458 = vmatprep.mubr.f32.mxu0 %v4855_v2 }
 0x26c   :  { %v1481_v61 = vpop.permute.xlu0 %1480  ;;  %v1581_v21 = vpop.permute.xlu1 %1580 }
 0x26d   :  { %v1483_v62 = vsel %vm448_vm3, %v1477_v10, %v1481_v61  ;;  %v1485_v63 = vsel %vm448_vm3, %v1481_v61, %v1477_v10 }
 0x26e   :  { %v1488_v5 = vmul.f32 %v1485_v63, %v5124_v1  ;;  %v1489_v12 = vmul.f32 %v1483_v62, %v5127_v3  ;;  %4331 = vmatmul.mubr.msk.f32.vlgmr.msra.gmra.mrb[4].mxu0 %vm97_vm0, %v5474_v60 }
 0x26f   :  { %1464 = vmatprep.mubr.f32.mxu0 %v4855_v2 }
 0x270   :  { %v4447_v9 = vpack.c.bf16 %v1488_v5, %v1486_v0  ;;  %v1583_v18 = vpop.permute.xlu0 %1582  ;;  %v1585_v19 = vpop.permute.xlu1 %1584  ;;  %v4445_v22 = vpack.c.bf16 %v1489_v12, %v1487_v4 }
 0x271   :  { %v1588_v1 = vsel %vm568_vm4, %v1581_v21, %v1585_v19  ;;  %v1590_v3 = vsel %vm568_vm4, %v1585_v19, %v1581_v21 }
 0x272   :  { %4332 = vmatmul.mubr.msk.f32.gmra.mrb[6].mxu0 %vm97_vm0, %v5487_v13  ;;  %4446 = vmatprep.subr.bf16.mxu0 %v4445_v22  ;;  %v1592_v27 = vmul.f32 %v1590_v3, %v5150_v36  ;;  %v1593_v28 = vmul.f32 %v1588_v1, %v5153_v37  ;;  %v5555_v1 = vld [vmem:[#allocation8 + $0x48] sm:$0xff] }
 0x273   :  { %4448 = vmatpush1.bf16.msra.mxu0 %v4447_v9  ;;  %1560 = vmatprep.mubr.f32.mxu0 %v4855_v2 }
 0x274   :  { %v1587_v29 = vpop.permute.xlu0 %1586  ;;  %v1781_v14 = vpop.permute.xlu1 %1780 }
 0x275   :  { %v1589_v17 = vsel %vm568_vm4, %v1583_v18, %v1587_v29  ;;  %v1591_v26 = vsel %vm568_vm4, %v1587_v29, %v1583_v18 }
 0x276   :  { %v1594_v31 = vmul.f32 %v1591_v26, %v5150_v36  ;;  %v1595_v32 = vmul.f32 %v1589_v17, %v5153_v37  ;;  %4333 = vmatmul.mubr.msk.f32.vlgmr.msra.gmra.mrb[4].mxu0 %vm97_vm0, %v5496_v24  ;;  %v5516_v37 = vld [vmem:[#allocation8 + $0x30] sm:$0xff] }
 0x277   :  { %1566 = vmatprep.mubr.f32.mxu0 %v4855_v2 }
 0x278   :  { %v4451_v39 = vpack.c.bf16 %v1594_v31, %v1592_v27  ;;  %v1783_v10 = vpop.permute.xlu0 %1782  ;;  %v1785_v56 = vpop.permute.xlu1 %1784  ;;  %v4449_v20 = vpack.c.bf16 %v1595_v32, %v1593_v28  ;;  %v5566_v28 = vld [vmem:[#allocation8 + $0x50] sm:$0xff] }
 0x279   :  { %v1790_v36 = vsel %vm795_vm5, %v1785_v56, %v1781_v14  ;;  %v1788_v50 = vsel %vm795_vm5, %v1781_v14, %v1785_v56 }
 0x27a   :  { %4334 = vmatmul.mubr.msk.f32.gmra.mrb[6].mxu0 %vm97_vm0, %v5509_v35  ;;  %4450 = vmatprep.subr.bf16.mxu0 %v4449_v20  ;;  %v1793_v21 = vmul.f32 %v1790_v36, %v5176_v57  ;;  %v5577_v36 = vld [vmem:[#allocation8 + $0x58] sm:$0xff] }
 0x27b   :  { %4452 = vmatpush1.bf16.msra.mxu0 %v4451_v39  ;;  %1666 = vmatprep.mubr.f32.mxu0 %v4855_v2 }
 0x27c   :  { %v1787_v46 = vpop.permute.xlu0 %1786  ;;  %4454 = vmatprep.subr.bf16.mxu0 %v4453_v53  ;;  %v1887_v47 = vpop.permute.xlu1 %1886 }
 0x27d   :  { %v1791_v61 = vsel %vm795_vm5, %v1787_v46, %v1783_v10  ;;  %v1789_v62 = vsel %vm795_vm5, %v1783_v10, %v1787_v46 }
 0x27e   :  { %v1795_v63 = vmul.f32 %v1791_v61, %v5176_v57  ;;  %4335 = vmatmul.mubr.msk.f32.vlgmr.msra.gmra.mrb[4].mxu0 %vm97_vm0, %v5516_v37  ;;  %v1794_v5 = vmul.f32 %v1789_v62, %v5180_v59  ;;  %v1792_v57 = vmul.f32 %v1788_v50, %v5180_v59  ;;  %v5588_v50 = vld [vmem:[#allocation8 + $0x60] sm:$0xff] }
 0x27f   :  { %4456 = vmatpush1.bf16.msra.mxu0 %v4455_v52  ;;  %1672 = vmatprep.mubr.f32.mxu0 %v4855_v2 }
 0x280   :  { %v1889_v53 = vpop.permute.xlu0 %1888  ;;  %v1891_v0 = vpop.permute.xlu1 %1890  ;;  %v4457_v4 = vpack.c.bf16 %v1795_v63, %v1793_v21  ;;  %v4459_v9 = vpack.c.bf16 %v1794_v5, %v1792_v57  ;;  %v4353_v57 = vld [vmem:[%s6079_s5 + $0x1] ss:$8 sm:$0x3] }
 0x281   :  { %v1896_v40 = vsel %vm915_vm6, %v1891_v0, %v1887_v47  ;;  %v1894_v3 = vsel %vm915_vm6, %v1887_v47, %v1891_v0 }
 0x282   :  { %4336 = vmatmul.mubr.msk.f32.gmra.mrb[6].mxu0 %vm97_vm0, %v5533_v48  ;;  %4458 = vmatprep.subr.bf16.mxu0 %v4457_v4  ;;  %v1899_v19 = vmul.f32 %v1896_v40, %v5208_v23 }
 0x283   :  { %1760 = vmatprep.mubr.f32.mxu0 %v4855_v2 }
 0x284   :  { %v1893_v52 = vpop.permute.xlu0 %1892  ;;  %v1993_v12 = vpop.permute.xlu1 %1992 }
 0x285   :  { %v1897_v18 = vsel %vm915_vm6, %v1893_v52, %v1889_v53  ;;  %v1895_v22 = vsel %vm915_vm6, %v1889_v53, %v1893_v52 }
 0x286   :  { %v1901_v59 = vmul.f32 %v1897_v18, %v5208_v23  ;;  %4337 = vmatmul.mubr.msk.f32.vlgmr.msra.gmra.mrb[4].mxu0 %vm97_vm0, %v5544_v43  ;;  %v1900_v26 = vmul.f32 %v1895_v22, %v5212_v15  ;;  %v1898_v23 = vmul.f32 %v1894_v3, %v5212_v15  ;;  %v5607_v22 = vrot.slane %v4353_v57, %v4988_v7 }
 0x287   :  { %4460 = vmatpush1.bf16.msra.mxu0 %v4459_v9  ;;  %1766 = vmatprep.mubr.f32.mxu0 %v4855_v2 }
 0x288   :  { %v1995_v29 = vpop.permute.xlu0 %1994  ;;  %v1997_v14 = vpop.permute.xlu1 %1996  ;;  %v4461_v17 = vpack.c.bf16 %v1901_v59, %v1899_v19  ;;  %v4463_v39 = vpack.c.bf16 %v1900_v26, %v1898_v23 }
 0x289   :  { %v2002_v27 = vsel %vm1035_vm7, %v1997_v14, %v1993_v12  ;;  %v2000_v46 = vsel %vm1035_vm7, %v1993_v12, %v1997_v14  ;;  %v5602_v12 = vld [vmem:[#allocation8 + $0x68] sm:$0xff]  ;;  %v5616_v14 = vld [vmem:[#allocation8 + $0x70] sm:$0xff] }
 0x28a   :  { %4338 = vmatmul.mubr.msk.f32.gmra.mrb[6].mxu0 %vm97_vm0, %v5555_v1  ;;  %4462 = vmatprep.subr.bf16.mxu0 %v4461_v17  ;;  %v2005_v56 = vmul.f32 %v2002_v27, %v5234_v44  ;;  %v5619_v17 = vrot.slane %v4353_v57, %v4993_v8 }
 0x28b   :  { %1866 = vmatprep.mubr.f32.mxu0 %v4855_v2 }
 0x28c   :  { %v1999_v31 = vpop.permute.xlu0 %1998  ;;  %v2099_v32 = vpop.permute.xlu1 %2098 }
 0x28d   :  { %v2003_v10 = vsel %vm1035_vm7, %v1999_v31, %v1995_v29  ;;  %v2001_v20 = vsel %vm1035_vm7, %v1995_v29, %v1999_v31 }
 0x28e   :  { %v2007_v15 = vmul.f32 %v2003_v10, %v5234_v44  ;;  %4339 = vmatmul.mubr.msk.f32.vlgmr.msra.gmra.mrb[4].mxu0 %vm97_vm0, %v5566_v28  ;;  %v2006_v62 = vmul.f32 %v2001_v20, %v5238_v49  ;;  %v2004_v44 = vmul.f32 %v2000_v46, %v5238_v49  ;;  %v2325_v10 = vld [vmem:[%s6079_s5] ss:$8 sm:$0x3]  ;;  %v5637_v46 = vld [vmem:[#allocation8 + $0x78] sm:$0xff] }
 0x28f   :  { %4464 = vmatpush1.bf16.msra.mxu0 %v4463_v39  ;;  %1872 = vmatprep.mubr.f32.mxu0 %v4855_v2 }
 0x290   :  { %v2101_v47 = vpop.permute.xlu0 %2100  ;;  %v2103_v61 = vpop.permute.xlu1 %2102  ;;  %v4465_v21 = vpack.c.bf16 %v2007_v15, %v2005_v56  ;;  %v4467_v4 = vpack.c.bf16 %v2006_v62, %v2004_v44 }
 0x291   :  { %v2108_v63 = vsel %vm1155_vm8, %v2103_v61, %v2099_v32  ;;  %v2106_v9 = vsel %vm1155_vm8, %v2099_v32, %v2103_v61 }
 0x292   :  { %4340 = vmatmul.mubr.msk.f32.gmra.mrb[6].mxu0 %vm97_vm0, %v5577_v36  ;;  %4466 = vmatprep.subr.bf16.mxu0 %v4465_v21  ;;  %v2111_v40 = vmul.f32 %v2108_v63, %v5260_v6  ;;  %v2110_v29 = vmul.f32 %v2106_v9, %v5264_v16  ;;  %v5640_v21 = vrot.slane %v2325_v10, %v4988_v7  ;;  %v4358_v9 = vld [vmem:[%s6079_s5 + $0x2] ss:$8 sm:$0x3] }
 0x293   :  { %1972 = vmatprep.mubr.f32.mxu0 %v4855_v2 }
 0x294   :  { %v2105_v53 = vpop.permute.xlu0 %2104  ;;  %v2344_v0 = vpop.permute.xlu1 %2343 }
 0x295   :  { %v2109_v5 = vsel %vm1155_vm8, %v2105_v53, %v2101_v47  ;;  %v2107_v49 = vsel %vm1155_vm8, %v2101_v47, %v2105_v53  ;;  %v5647_v53 = vld [vmem:[#allocation8 + $0x80] sm:$0xff] }
 0x296   :  { %v2113_v52 = vmul.f32 %v2109_v5, %v5260_v6  ;;  %4341 = vmatmul.mubr.msk.f32.vlgmr.msra.gmra.mrb[4].mxu0 %vm97_vm0, %v5588_v50  ;;  %v2112_v3 = vmul.f32 %v2107_v49, %v5264_v16 }
 0x297   :  { %4468 = vmatpush1.bf16.msra.mxu0 %v4467_v4  ;;  %1978 = vmatprep.mubr.f32.mxu0 %v4855_v2 }
 0x298   :  { %v4469_v18 = vpack.c.bf16 %v2113_v52, %v2111_v40  ;;  %v2346_v19 = vpop.permute.xlu0 %2345  ;;  %v2348_v59 = vpop.permute.xlu1 %2347  ;;  %v4471_v32 = vpack.c.bf16 %v2112_v3, %v2110_v29  ;;  %v5668_v3 = vld [vmem:[#allocation8 + $0x88] sm:$0xff] }
 0x299   :  { %v2351_v6 = vsel %vm249_vm1, %v2344_v0, %v2348_v59  ;;  %v2353_v23 = vsel %vm249_vm1, %v2348_v59, %v2344_v0  ;;  %v5650_v0 = vrot.slane %v2325_v10, %v4993_v8  ;;  %6082 = vst [vmem:[#allocation15_spill] sm:$0xff] %v5668_v3 }
 0x29a   :  { %4342 = vmatmul.mubr.msk.f32.gmra.mrb[6].mxu0 %vm97_vm0, %v5602_v12  ;;  %4470 = vmatprep.subr.bf16.mxu0 %v4469_v18  ;;  %v2368_v27 = vmul.f32 %v5607_v22, %v2351_v6  ;;  %v2367_v15 = vmul.f32 %v5619_v17, %v2353_v23 }
 0x29b   :  { %2078 = vmatprep.mubr.f32.mxu0 %v4855_v2 }
 0x29c   :  { %v2350_v26 = vpop.permute.xlu0 %2349  ;;  %v2314_v31 = vpop.permute.xlu1 %2313 }
 0x29d   :  { %v2352_v39 = vsel %vm249_vm1, %v2346_v19, %v2350_v26  ;;  %v2354_v16 = vsel %vm249_vm1, %v2350_v26, %v2346_v19  ;;  %v5671_v26 = vrot.slane %v4358_v9, %v4988_v7 }
 0x29e   :  { %4343 = vmatmul.mubr.msk.f32.vlgmr.msra.gmra.mrb[4].mxu0 %vm97_vm0, %v5616_v14  ;;  %v2370_v56 = vmul.f32 %v5607_v22, %v2352_v39  ;;  %v2369_v20 = vmul.f32 %v5619_v17, %v2354_v16  ;;  %v5679_v39 = vrot.slane %v4358_v9, %v4993_v8  ;;  %v4364_v9 = vld [vmem:[%s6079_s5 + $0x4] ss:$8 sm:$0x3] }
 0x29f   :  { %4472 = vmatpush1.bf16.msra.mxu0 %v4471_v32  ;;  %2084 = vmatprep.mubr.f32.mxu0 %v4855_v2  ;;  %v2341_v32 = vld [vmem:[#allocation7 + $0x10] sm:$0xff] }
 0x2a0   :  { %v2316_v47 = vpop.permute.xlu0 %2315  ;;  %v4477_v61 = vpack.c.bf16 %v2370_v56, %v2368_v27  ;;  %v2318_v62 = vpop.permute.xlu1 %2317  ;;  %v4479_v63 = vpack.c.bf16 %v2369_v20, %v2367_v15  ;;  %v6083_v25 = vld [vmem:[#allocation15_spill] sm:$0xff] }
 0x2a1   :  { %v2321_v44 = vsel %vm217_vm2, %v2314_v31, %v2318_v62  ;;  %v2323_v5 = vsel %vm217_vm2, %v2318_v62, %v2314_v31 }
 0x2a2   :  { %4344 = vmatmul.mubr.msk.f32.gmra.mrb[6].mxu0 %vm97_vm0, %v5637_v46  ;;  %4478 = vmatprep.subr.bf16.mxu0 %v4477_v61  ;;  %v2338_v57 = vmul.f32 %v5640_v21, %v2321_v44  ;;  %v2337_v59 = vmul.f32 %v5650_v0, %v2323_v5  ;;  %v4361_v61 = vld [vmem:[%s6079_s5 + $0x3] ss:$8 sm:$0x3] }
 0x2a3   :  { %2184 = vmatprep.mubr.f32.mxu0 %v4855_v2 }
 0x2a4   :  { %v2320_v4 = vpop.permute.xlu0 %2319  ;;  %v2540_v40 = vpop.permute.xlu1 %2539 }
 0x2a5   :  { %v2322_v49 = vsel %vm217_vm2, %v2316_v47, %v2320_v4  ;;  %v2324_v52 = vsel %vm217_vm2, %v2320_v4, %v2316_v47  ;;  %v2342_v4 = vld [vmem:[#allocation7 + $0x18] sm:$0xff] }
 0x2a6   :  { %4345 = vmatmul.mubr.msk.f32.vlgmr.msra.gmra.mrb[4].mxu0 %vm97_vm0, %v5647_v53  ;;  %v2340_v18 = vmul.f32 %v5640_v21, %v2322_v49  ;;  %v2339_v19 = vmul.f32 %v5650_v0, %v2324_v52 }
 0x2a7   :  { %4480 = vmatpush1.bf16.msra.mxu0 %v4479_v63  ;;  %2190 = vmatprep.mubr.f32.mxu0 %v4855_v2 }
 0x2a8   :  { %v2542_v6 = vpop.permute.xlu0 %2541  ;;  %v4481_v29 = vpack.c.bf16 %v2340_v18, %v2338_v57  ;;  %v2544_v23 = vpop.permute.xlu1 %2543  ;;  %v4483_v31 = vpack.c.bf16 %v2339_v19, %v2337_v59  ;;  %v2311_v19 = vld [vmem:[#allocation7] sm:$0xff]  ;;  %v5707_v59 = vrot.slane %v4361_v61, %v4993_v8 }
 0x2a9   :  { %v2547_v27 = vsel %vm448_vm3, %v2540_v40, %v2544_v23  ;;  %v2549_v10 = vsel %vm448_vm3, %v2544_v23, %v2540_v40  ;;  %v5697_v40 = vrot.slane %v4361_v61, %v4988_v7 }
 0x2aa   :  { %4346 = vmatmul.mubr.msk.f32.gmra.mrb[6].mxu0 %vm97_vm0, %v5668_v3  ;;  %4482 = vmatprep.subr.bf16.mxu0 %v4481_v29  ;;  %v2564_v56 = vmul.f32 %v5671_v26, %v2547_v27  ;;  %v2563_v63 = vmul.f32 %v5679_v39, %v2549_v10 }
 0x2ab   :  { %2441 = vmatprep.mubr.f32.mxu0 %v4855_v2 }
 0x2ac   :  { %v2546_v16 = vpop.permute.xlu0 %2545  ;;  %v2657_v20 = vpop.permute.xlu1 %2656 }
 0x2ad   :  { %v2548_v15 = vsel %vm448_vm3, %v2542_v6, %v2546_v16  ;;  %v2550_v47 = vsel %vm448_vm3, %v2546_v16, %v2542_v6 }
 0x2ae   :  { %4354 = vmatmul.mubr.msk.f32.vlgmr.msra.gmra.mrb[8].mxu0 %vm97_vm0, %v2341_v32  ;;  %v2566_v62 = vmul.f32 %v5671_v26, %v2548_v15  ;;  %v2565_v44 = vmul.f32 %v5679_v39, %v2550_v47  ;;  %v2312_v15 = vld [vmem:[#allocation7 + $0x8] sm:$0xff] }
 0x2af   :  { %4484 = vmatpush1.bf16.msra.mxu0 %v4483_v31  ;;  %2447 = vmatprep.mubr.f32.mxu0 %v4855_v2  ;;  %v5713_v31 = vrot.slane %v4364_v9, %v4988_v7 }
 0x2b0   :  { %v2659_v5 = vpop.permute.xlu0 %2658  ;;  %v4485_v57 = vpack.c.bf16 %v2566_v62, %v2564_v56  ;;  %v2661_v49 = vpop.permute.xlu1 %2660  ;;  %v4487_v18 = vpack.c.bf16 %v2565_v44, %v2563_v63 }
 0x2b1   :  { %v2664_v52 = vsel %vm568_vm4, %v2657_v20, %v2661_v49  ;;  %v2666_v29 = vsel %vm568_vm4, %v2661_v49, %v2657_v20  ;;  %v2786_v44 = vmul.f32 %v5713_v31, %v5280_v33  ;;  %v2788_v63 = vmul.f32 %v5713_v31, %v5282_v34 }
 0x2b2   :  { %4355 = vmatmul.mubr.msk.f32.gmra.mrb[10].mxu0 %vm97_vm0, %v2342_v4  ;;  %4486 = vmatprep.subr.bf16.mxu0 %v4485_v57  ;;  %v2681_v23 = vmul.f32 %v5697_v40, %v2664_v52  ;;  %v2680_v20 = vmul.f32 %v5707_v59, %v2666_v29  ;;  %v4367_v4 = vld [vmem:[%s6079_s5 + $0x5] ss:$8 sm:$0x3]  ;;  %v2537_v57 = vld [vmem:[#allocation7 + $0x20] sm:$0xff]  ;;  %v5734_v49 = vrot.slane %v4364_v9, %v4993_v8  ;;  %v2538_v29 = vld [vmem:[#allocation7 + $0x28] sm:$0xff] }
 0x2b3   :  { %2524 = vmatprep.mubr.f32.mxu0 %v4855_v2  ;;  %v5737_v52 = vrot.slane %v4367_v4, %v4988_v7 }
 0x2b4   :  { %v2663_v6 = vpop.permute.xlu0 %2662  ;;  %v2879_v27 = vpop.permute.xlu1 %2878  ;;  %v2785_v9 = vmul.f32 %v5734_v49, %v5290_v41  ;;  %v5757_v41 = vrot.slane %v4367_v4, %v4993_v8 }
 0x2b5   :  { %v2665_v32 = vsel %vm568_vm4, %v2659_v5, %v2663_v6  ;;  %v2667_v16 = vsel %vm568_vm4, %v2663_v6, %v2659_v5 }
 0x2b6   :  { %4356 = vmatmul.mubr.msk.f32.vlgmr.msra.gmra.mrb[8].mxu0 %vm97_vm0, %v2311_v19  ;;  %v2683_v10 = vmul.f32 %v5697_v40, %v2665_v32  ;;  %v2682_v56 = vmul.f32 %v5707_v59, %v2667_v16 }
 0x2b7   :  { %4488 = vmatpush1.bf16.msra.mxu0 %v4487_v18  ;;  %2530 = vmatprep.mubr.f32.mxu0 %v4855_v2  ;;  %v4493_v18 = vpack.c.bf16 %v2788_v63, %v2786_v44 }
 0x2b8   :  { %v4489_v47 = vpack.c.bf16 %v2683_v10, %v2681_v23  ;;  %v2881_v61 = vpop.permute.xlu0 %2880  ;;  %v2883_v62 = vpop.permute.xlu1 %2882  ;;  %v4491_v5 = vpack.c.bf16 %v2682_v56, %v2680_v20  ;;  %v2787_v23 = vmul.f32 %v5734_v49, %v5292_v42  ;;  %v4370_v20 = vld [vmem:[%s6079_s5 + $0x6] ss:$8 sm:$0x3] }
 0x2b9   :  { %v2888_v6 = vsel %vm795_vm5, %v2883_v62, %v2879_v27  ;;  %v2886_v44 = vsel %vm795_vm5, %v2879_v27, %v2883_v62  ;;  %v2655_v27 = vld [vmem:[#allocation7 + $0x38] sm:$0xff] }
 0x2ba   :  { %4357 = vmatmul.mubr.msk.f32.gmra.mrb[10].mxu0 %vm97_vm0, %v2312_v15  ;;  %4490 = vmatprep.subr.bf16.mxu0 %v4489_v47  ;;  %v2903_v16 = vmul.f32 %v5737_v52, %v2888_v6  ;;  %v2654_v15 = vld [vmem:[#allocation7 + $0x30] sm:$0xff]  ;;  %v4495_v42 = vpack.c.bf16 %v2787_v23, %v2785_v9 }
 0x2bb   :  { %2637 = vmatprep.mubr.f32.mxu0 %v4855_v2  ;;  %v4373_v23 = vld [vmem:[%s6079_s5 + $0x7] ss:$8 sm:$0x3] }
 0x2bc   :  { %v2885_v33 = vpop.permute.xlu0 %2884  ;;  %v2996_v34 = vpop.permute.xlu1 %2995 }
 0x2bd   :  { %v2889_v19 = vsel %vm795_vm5, %v2885_v33, %v2881_v61  ;;  %v2887_v47 = vsel %vm795_vm5, %v2881_v61, %v2885_v33  ;;  %v2902_v61 = vmul.f32 %v5757_v41, %v2886_v44 }
 0x2be   :  { %4359 = vmatmul.mubr.msk.f32.vlgmr.msra.gmra.mrb[8].mxu0 %vm97_vm0, %v2537_v57  ;;  %v2905_v32 = vmul.f32 %v5737_v52, %v2889_v19  ;;  %v2904_v6 = vmul.f32 %v5757_v41, %v2887_v47 }
 0x2bf   :  { %4492 = vmatpush1.bf16.msra.mxu0 %v4491_v5  ;;  %2643 = vmatprep.mubr.f32.mxu0 %v4855_v2  ;;  %v5764_v5 = vrot.slane %v4370_v20, %v4988_v7 }
 0x2c0   :  { %4494 = vmatprep.subr.bf16.mxu0 %v4493_v18  ;;  %v2998_v10 = vpop.permute.xlu0 %2997  ;;  %v3000_v56 = vpop.permute.xlu1 %2999  ;;  %v4497_v63 = vpack.c.bf16 %v2905_v32, %v2903_v16  ;;  %v4499_v32 = vpack.c.bf16 %v2904_v6, %v2902_v61  ;;  %v2771_v16 = vld [vmem:[#allocation7 + $0x40] sm:$0xff] }
 0x2c1   :  { %v3005_v4 = vsel %vm915_vm6, %v3000_v56, %v2996_v34  ;;  %v3003_v47 = vsel %vm915_vm6, %v2996_v34, %v3000_v56  ;;  %v2772_v34 = vld [vmem:[#allocation7 + $0x48] sm:$0xff] }
 0x2c2   :  { %4360 = vmatmul.mubr.msk.f32.gmra.mrb[10].mxu0 %vm97_vm0, %v2538_v29  ;;  %v3020_v33 = vmul.f32 %v5764_v5, %v3005_v4 }
 0x2c3   :  { %2754 = vmatprep.mubr.f32.mxu0 %v4855_v2 }
 0x2c4   :  { %v3002_v57 = vpop.permute.xlu0 %3001  ;;  %v3113_v18 = vpop.permute.xlu1 %3112 }
 0x2c5   :  { %v3006_v19 = vsel %vm915_vm6, %v3002_v57, %v2998_v10 }
 0x2c6   :  { %4362 = vmatmul.mubr.msk.f32.vlgmr.msra.gmra.mrb[8].mxu0 %vm97_vm0, %v2654_v15  ;;  %v3022_v62 = vmul.f32 %v5764_v5, %v3006_v19  ;;  %v5782_v15 = vrot.slane %v4370_v20, %v4993_v8 }
 0x2c7   :  { %2760 = vmatprep.mubr.f32.mxu0 %v4855_v2  ;;  %4496 = vmatpush1.bf16.msra.mxu0 %v4495_v42  ;;  %v3004_v42 = vsel %vm915_vm6, %v2998_v10, %v3002_v57 }
 0x2c8   :  { %4498 = vmatprep.subr.bf16.mxu0 %v4497_v63  ;;  %v3115_v29 = vpop.permute.xlu0 %3114  ;;  %v3117_v9 = vpop.permute.xlu1 %3116  ;;  %v4501_v44 = vpack.c.bf16 %v3022_v62, %v3020_v33  ;;  %v5789_v63 = vrot.slane %v4373_v23, %v4988_v7  ;;  %v3021_v10 = vmul.f32 %v5782_v15, %v3004_v42  ;;  %v3019_v20 = vmul.f32 %v5782_v15, %v3003_v47  ;;  %v4376_v62 = vld [vmem:[%s6079_s5 + $0x10] ss:$8 sm:$0x3]  ;;  %s4864_s5 = smov [#allocation10]  }
 0x2c9   :  { %v3122_v61 = vsel %vm1035_vm7, %v3117_v9, %v3113_v18  ;;  %v5807_v42 = vrot.slane %v4373_v23, %v4993_v8 }
 0x2ca   :  { %4363 = vmatmul.mubr.msk.f32.gmra.mrb[10].mxu0 %vm97_vm0, %v2655_v27  ;;  %v3137_v57 = vmul.f32 %v5789_v63, %v3122_v61  ;;  %v5814_v61 = vrot.slane %v4376_v62, %v4988_v7 }
 0x2cb   :  { %2859 = vmatprep.mubr.f32.mxu0 %v4855_v2 }
 0x2cc   :  { %v3119_v19 = vpop.permute.xlu0 %3118  ;;  %v3230_v4 = vpop.permute.xlu1 %3229 }
 0x2cd   :  { %v3123_v6 = vsel %vm1035_vm7, %v3119_v19, %v3115_v29  ;;  %v3121_v47 = vsel %vm1035_vm7, %v3115_v29, %v3119_v19 }
 0x2ce   :  { %4365 = vmatmul.mubr.msk.f32.vlgmr.msra.gmra.mrb[8].mxu0 %vm97_vm0, %v2771_v16  ;;  %v3139_v56 = vmul.f32 %v5789_v63, %v3123_v6  ;;  %v2876_v16 = vld [vmem:[#allocation7 + $0x50] sm:$0xff]  ;;  %v3138_v23 = vmul.f32 %v5807_v42, %v3121_v47 }
 0x2cf   :  { %4500 = vmatpush1.bf16.msra.mxu0 %v4499_v32  ;;  %2865 = vmatprep.mubr.f32.mxu0 %v4855_v2  ;;  %v4503_v32 = vpack.c.bf16 %v3021_v10, %v3019_v20 }
 0x2d0   :  { %4502 = vmatprep.subr.bf16.mxu0 %v4501_v44  ;;  %v3232_v27 = vpop.permute.xlu0 %3231  ;;  %v3234_v33 = vpop.permute.xlu1 %3233  ;;  %v3120_v44 = vsel %vm1035_vm7, %v3113_v18, %v3117_v9  ;;  %v4505_v6 = vpack.c.bf16 %v3139_v56, %v3137_v57  ;;  %v2877_v18 = vld [vmem:[#allocation7 + $0x58] sm:$0xff]  ;;  %v5829_v56 = vrot.slane %v4376_v62, %v4993_v8  ;;  %v3228_v62 = vld [vmem:[#allocation7 + $0x88] sm:$0xff] }
 0x2d1   :  { %v3239_v20 = vsel %vm1155_vm8, %v3234_v33, %v3230_v4  ;;  %v3136_v29 = vmul.f32 %v5807_v42, %v3120_v44 }
 0x2d2   :  { %4366 = vmatmul.mubr.msk.f32.gmra.mrb[10].mxu0 %vm97_vm0, %v2772_v34  ;;  %v3254_v9 = vmul.f32 %v5814_v61, %v3239_v20  ;;  %v2993_v34 = vld [vmem:[#allocation7 + $0x60] sm:$0xff] }
 0x2d3   :  { %2976 = vmatprep.mubr.f32.mxu0 %v4855_v2  ;;  %v4507_v19 = vpack.c.bf16 %v3138_v23, %v3136_v29  ;;  %v2277_v29 = vadd.f32 %v5325_v45, %v5308_v54 }
 0x2d4   :  { %v3236_v3 = vpop.permute.xlu0 %3235 }
 0x2d5   :  { %v3240_v10 = vsel %vm1155_vm8, %v3236_v3, %v3232_v27  ;;  %v3238_v57 = vsel %vm1155_vm8, %v3232_v27, %v3236_v3  ;;  %v3110_v3 = vld [vmem:[#allocation7 + $0x70] sm:$0xff]  ;;  %v3227_v27 = vld [vmem:[#allocation7 + $0x80] sm:$0xff] }
 0x2d6   :  { %4368 = vmatmul.mubr.msk.f32.vlgmr.msra.gmra.mrb[8].mxu0 %vm97_vm0, %v2876_v16  ;;  %v3256_v7 = vmul.f32 %v5814_v61, %v3240_v10  ;;  %v3255_v47 = vmul.f32 %v5829_v56, %v3238_v57 }
 0x2d7   :  { %4504 = vmatpush1.bf16.msra.mxu0 %v4503_v32  ;;  %2982 = vmatprep.mubr.f32.mxu0 %v4855_v2  ;;  %v3237_v32 = vsel %vm1155_vm8, %v3230_v4, %v3234_v33  ;;  %v3111_v4 = vld [vmem:[#allocation7 + $0x78] sm:$0xff] }
 0x2d8   :  { %4506 = vmatprep.subr.bf16.mxu0 %v4505_v6  ;;  %v4509_v16 = vpack.c.bf16 %v3256_v7, %v3254_v9  ;;  %v3253_v44 = vmul.f32 %v5829_v56, %v3237_v32  ;;  %v2994_v6 = vld [vmem:[#allocation7 + $0x68] sm:$0xff]  ;;  %v4349_v7 = vmul.f32 -1.442695, %v2277_v29  ;;  %v2283_v9 = vadd.f32 %v5341_v11, %v5312_v58 }
 0x2da   :  { %4369 = vmatmul.mubr.msk.f32.gmra.mrb[10].mxu0 %vm97_vm0, %v2877_v18  ;;  %v4511_v8 = vpack.c.bf16 %v3255_v47, %v3253_v44  ;;  %v2279_v18 = vadd.f32 %v5333_v51, %v5308_v54  ;;  %4713 = vpow2.f32 %v4349_v7  ;;  %v4351_v57 = vmul.f32 -1.442695, %v2283_v9 }
 0x2db   :  { %3093 = vmatprep.mubr.f32.mxu0 %v4855_v2 }
 0x2de   :  { %4371 = vmatmul.mubr.msk.f32.vlgmr.msra.gmra.mrb[8].mxu0 %vm97_vm0, %v2993_v34  ;;  %v2285_v34 = vadd.f32 %v5343_v55, %v5312_v58 }
 0x2df   :  { %4508 = vmatpush1.bf16.msra.mxu0 %v4507_v19  ;;  %3099 = vmatprep.mubr.f32.mxu0 %v4855_v2  ;;  %v4350_v19 = vmul.f32 -1.442695, %v2279_v18 }
 0x2e0   :  { %4510 = vmatprep.subr.bf16.mxu0 %v4509_v16  ;;  %v4352_v32 = vmul.f32 -1.442695, %v2285_v34 }
 0x2e1   :  { %4715 = vpow2.f32 %v4350_v19 }
 0x2e2   :  { %4372 = vmatmul.mubr.msk.f32.gmra.mrb[10].mxu0 %vm97_vm0, %v2994_v6  ;;  %4717 = vpow2.f32 %v4351_v57 }
 0x2e3   :  { %3210 = vmatprep.mubr.f32.mxu0 %v4855_v2  ;;  %4719 = vpow2.f32 %v4352_v32 }
 0x2e4   :  { %v4714_v16 = vpop.eup %4713 }
 0x2e5   :  { %v2299_v45 = vadd.f32 1.0, %v4714_v16 }
 0x2e6   :  { %4374 = vmatmul.mubr.msk.f32.vlgmr.msra.gmra.mrb[8].mxu0 %vm97_vm0, %v3110_v3 }
 0x2e7   :  { %4512 = vmatpush1.bf16.msra.mxu0 %v4511_v8  ;;  %3216 = vmatprep.mubr.f32.mxu0 %v4855_v2  ;;  %4721 = vrcp.f32 %v2299_v45 }
 0x2ea   :  { %4375 = vmatmul.mubr.msk.f32.gmra.mrb[10].mxu0 %vm97_vm0, %v3111_v4 }
 0x2eb   :  { %3327 = vmatprep.mubr.f32.mxu0 %v4855_v2  ;;  %v4716_v47 = vpop.eup %4715 }
 0x2ec   :  { %v4718_v44 = vpop.eup %4717  ;;  %v2300_v6 = vadd.f32 1.0, %v4716_v47 }
 0x2ed   :  { %v4720_v54 = vpop.eup %4719  ;;  %v2301_v51 = vadd.f32 1.0, %v4718_v44 }
 0x2ee   :  { %4377 = vmatmul.mubr.msk.f32.vlgmr.msra.gmra.mrb[8].mxu0 %vm97_vm0, %v3227_v27  ;;  %4723 = vrcp.f32 %v2300_v6  ;;  %v2302_v11 = vadd.f32 1.0, %v4720_v54 }
 0x2ef   :  { %3333 = vmatprep.mubr.f32.mxu0 %v4855_v2  ;;  %4725 = vrcp.f32 %v2301_v51 }
 0x2f0   :  { %4727 = vrcp.f32 %v2302_v11 }
 0x2f1   :  { %v4722_v8 = vpop.eup %4721 }
 0x2f2   :  { %4378 = vmatmul.mubr.msk.f32.gmra.mrb[10].mxu0 %vm97_vm0, %v3228_v62 }
 0x2f8   :  { %v4724_v55 = vpop.eup %4723 }
 0x2f9   :  { %v4726_v62 = vpop.eup %4725 }
 0x379   :  { %v2186_v33 = vpop.f32.mrb[4].mxu0 }
 0x37a   :  { %2201 = vst [vmem:[#allocation10] sm:$0xff] %v2186_v33  ;;  %v2188_v10 = vpop.f32.mrb[5].mxu0 }
 0x37b   :  { %2202 = vst [vmem:[#allocation10 + $0x8] sm:$0xff] %v2188_v10  ;;  %v4728_v10 = vpop.eup %4727 }
 0x37d   :  { %v2192_v20 = vpop.f32.mrb[6].mxu0 }
 0x37e   :  { %2203 = vst [vmem:[#allocation10 + $0x10] sm:$0xff] %v2192_v20  ;;  %v2194_v23 = vpop.f32.mrb[7].mxu0 }
 0x37f   :  { %2204 = vst [vmem:[#allocation10 + $0x18] sm:$0xff] %v2194_v23 }
 0x3c1   :  { %v3329_v58 = vpop.f32.mrb[8].mxu0 }
 0x3c2   :  { %v3344_v3 = vmul.f32 %v4722_v8, %v3329_v58  ;;  %v3331_v4 = vpop.f32.mrb[9].mxu0 }
 0x3c3   :  { %v3345_v27 = vmul.f32 %v4724_v55, %v3331_v4 }
 0x3c4   :  { %3368 = vrot.lane.b32.xlu1 %v3344_v3, %s4852_s21  ;;  %v5860_v18 = vmul.f32 %v3344_v3, %v5734_v49 }
 0x3c5   :  { %v3335_v33 = vpop.f32.mrb[10].mxu0  ;;  %v5866_v9 = vmul.f32 %v3345_v27, %v5713_v31 }
 0x3c6   :  { %v3346_v20 = vmul.f32 %v4726_v62, %v3335_v33  ;;  %v3337_v23 = vpop.f32.mrb[11].mxu0 }
 0x3c7   :  { %v3347_v29 = vmul.f32 %v4728_v10, %v3337_v23 }
 0x3c8   :  { %3372 = vrot.lane.b32.xlu1 %v3345_v27, %s4852_s21  ;;  %3370 = vrot.lane.b32.xlu0 %v3346_v20, %s4852_s21  ;;  %v5863_v7 = vmul.f32 %v3346_v20, %v5734_v49 }
 0x3c9   :  { %v5869_v19 = vmul.f32 %v3347_v29, %v5713_v31 }
 0x3ca   :  { %v4531_v34 = vpack.c.bf16 %v5863_v7, %v5860_v18 }
 0x3cb   :  { %v4529_v57 = vpack.c.bf16 %v5869_v19, %v5866_v9 }
 0x3cc   :  { %3350 = vrot.lane.b32.xlu1 %v3344_v3, %s4856_s4  ;;  %3374 = vrot.lane.b32.xlu0 %v3347_v29, %s4852_s21 }
 0x3d0   :  { %3354 = vrot.lane.b32.xlu1 %v3345_v27, %s4856_s4  ;;  %3352 = vrot.lane.b32.xlu0 %v3346_v20, %s4856_s4 }
 0x3d4   :  { %3552 = vrot.lane.b32.xlu1 %v3344_v3, %s4857_s7  ;;  %3356 = vrot.lane.b32.xlu0 %v3347_v29, %s4856_s4  ;;  %s4283_s4 = sshll.u32 %s4864_s5, 4  ;;  %s4284_s4 = int_to_ptr.vmem [resolvable:$true] %s4283_s4 }
 0x3d5   :  { %p4822_p5 = scmp.lt.s32.totalorder %s4284_s4, %s4284_s4 }
 0x3d8   :  { %3556 = vrot.lane.b32.xlu1 %v3345_v27, %s4857_s7  ;;  %3554 = vrot.lane.b32.xlu0 %v3346_v20, %s4857_s7 }
 0x3dc   :  { %3657 = vrot.lane.b32.xlu1 %v3344_v3, %s4858_s26  ;;  %3558 = vrot.lane.b32.xlu0 %v3347_v29, %s4857_s7  ;;  %s4817_s7 = scalar_lea.vmem %s4284_s4, 1024 }
 0x3dd   :  { %p4818_p4 = scmp.ne.s32.totalorder %s4284_s4, %s4817_s7  ;;  %p4823_p6 = scmp.lt.s32.totalorder %s4817_s7, %s4817_s7 }
 0x3df   :  { %p4824_p7 = por %p4823_p6, %p4822_p5 }
 0x3e0   :  { %3661 = vrot.lane.b32.xlu1 %v3345_v27, %s4858_s26  ;;  %3659 = vrot.lane.b32.xlu0 %v3346_v20, %s4858_s26 }
 0x3e1   :  { %p4825_p8 = pnand %p4824_p7, %p4818_p4 }
 0x3e4   :  { %3855 = vrot.lane.b32.xlu1 %v3344_v3, %s4859_s27  ;;  %3663 = vrot.lane.b32.xlu0 %v3347_v29, %s4858_s26 }
 0x3e8   :  { %3859 = vrot.lane.b32.xlu1 %v3345_v27, %s4859_s27  ;;  %3857 = vrot.lane.b32.xlu0 %v3346_v20, %s4859_s27 }
 0x3ec   :  { %3960 = vrot.lane.b32.xlu1 %v3344_v3, %s4860_s28  ;;  %3861 = vrot.lane.b32.xlu0 %v3347_v29, %s4859_s27 }
 0x3f0   :  { %3964 = vrot.lane.b32.xlu1 %v3345_v27, %s4860_s28  ;;  %3962 = vrot.lane.b32.xlu0 %v3346_v20, %s4860_s28 }
 0x3f4   :  { %4065 = vrot.lane.b32.xlu1 %v3344_v3, %s4861_s29  ;;  %3966 = vrot.lane.b32.xlu0 %v3347_v29, %s4860_s28 }
 0x3f8   :  { %4069 = vrot.lane.b32.xlu1 %v3345_v27, %s4861_s29  ;;  %4067 = vrot.lane.b32.xlu0 %v3346_v20, %s4861_s29 }
 0x3fc   :  { %4170 = vrot.lane.b32.xlu1 %v3344_v3, %s4862_s30  ;;  %4071 = vrot.lane.b32.xlu0 %v3347_v29, %s4861_s29 }
 0x400   :  { %4174 = vrot.lane.b32.xlu1 %v3345_v27, %s4862_s30  ;;  %4172 = vrot.lane.b32.xlu0 %v3346_v20, %s4862_s30 }
 0x404   :  { %4176 = vrot.lane.b32.xlu0 %v3347_v29, %s4862_s30 }
 0x436   :  { %v3369_v31 = vpop.permute.xlu1 %3368 }
 0x43a   :  { %v3373_v49 = vpop.permute.xlu1 %3372  ;;  %v3371_v32 = vpop.permute.xlu0 %3370 }
 0x43b   :  { %v3376_v16 = vsel %vm249_vm1, %v3369_v31, %v3373_v49  ;;  %v3378_v47 = vsel %vm249_vm1, %v3373_v49, %v3369_v31 }
 0x43c   :  { %v3380_v51 = vmul.f32 %v3378_v47, %v5619_v17  ;;  %v3381_v11 = vmul.f32 %v3376_v16, %v5607_v22 }
 0x43e   :  { %v3351_v45 = vpop.permute.xlu1 %3350  ;;  %v3375_v44 = vpop.permute.xlu0 %3374 }
 0x43f   :  { %v3377_v6 = vsel %vm249_vm1, %v3371_v32, %v3375_v44  ;;  %v3379_v54 = vsel %vm249_vm1, %v3375_v44, %v3371_v32 }
 0x440   :  { %v3382_v8 = vmul.f32 %v3379_v54, %v5619_v17  ;;  %v3383_v58 = vmul.f32 %v3377_v6, %v5607_v22 }
 0x442   :  { %v4515_v55 = vpack.c.bf16 %v3382_v8, %v3380_v51  ;;  %v3355_v3 = vpop.permute.xlu1 %3354  ;;  %v3353_v4 = vpop.permute.xlu0 %3352  ;;  %v4513_v27 = vpack.c.bf16 %v3383_v58, %v3381_v11 }
 0x443   :  { %v3358_v62 = vsel %vm217_vm2, %v3351_v45, %v3355_v3  ;;  %v3360_v33 = vsel %vm217_vm2, %v3355_v3, %v3351_v45 }
 0x444   :  { %4514 = vmatprep.subr.bf16.mxu1 %v4513_v27  ;;  %v3362_v17 = vmul.f32 %v3360_v33, %v5650_v0  ;;  %v3363_v29 = vmul.f32 %v3358_v62, %v5640_v21 }
 0x445   :  { %4516 = vmatpush1.bf16.msra.mxu1 %v4515_v55 }
 0x446   :  { %v3553_v10 = vpop.permute.xlu1 %3552  ;;  %v3357_v20 = vpop.permute.xlu0 %3356 }
 0x447   :  { %v3359_v23 = vsel %vm217_vm2, %v3353_v4, %v3357_v20  ;;  %v3361_v22 = vsel %vm217_vm2, %v3357_v20, %v3353_v4 }
 0x448   :  { %v3364_v31 = vmul.f32 %v3361_v22, %v5650_v0  ;;  %v3365_v49 = vmul.f32 %v3359_v23, %v5640_v21  ;;  %4379 = vmatmul.mubr.msk.f32.vlgmr.msra.gmra.mrb[8].mxu1 %vm97_vm0, %v5452_v30 }
 0x449   :  { %3460 = vmatprep.mubr.f32.mxu1 %v4855_v2 }
 0x44a   :  { %v4519_v32 = vpack.c.bf16 %v3364_v31, %v3362_v17  ;;  %v3557_v16 = vpop.permute.xlu1 %3556  ;;  %v3555_v47 = vpop.permute.xlu0 %3554  ;;  %v4517_v45 = vpack.c.bf16 %v3365_v49, %v3363_v29 }
 0x44b   :  { %v3560_v44 = vsel %vm448_vm3, %v3553_v10, %v3557_v16  ;;  %v3562_v0 = vsel %vm448_vm3, %v3557_v16, %v3553_v10 }
 0x44c   :  { %4380 = vmatmul.mubr.msk.f32.gmra.mrb[10].mxu1 %vm97_vm0, %v5465_v38  ;;  %4518 = vmatprep.subr.bf16.mxu1 %v4517_v45  ;;  %v3564_v38 = vmul.f32 %v3562_v0, %v5679_v39  ;;  %v3565_v51 = vmul.f32 %v3560_v44, %v5671_v26 }
 0x44d   :  { %4520 = vmatpush1.bf16.msra.mxu1 %v4519_v32  ;;  %3537 = vmatprep.mubr.f32.mxu1 %v4855_v2 }
 0x44e   :  { %v3658_v30 = vpop.permute.xlu1 %3657  ;;  %v3559_v21 = vpop.permute.xlu0 %3558 }
 0x44f   :  { %v3561_v6 = vsel %vm448_vm3, %v3555_v47, %v3559_v21  ;;  %v3563_v54 = vsel %vm448_vm3, %v3559_v21, %v3555_v47 }
 0x450   :  { %v3566_v11 = vmul.f32 %v3563_v54, %v5679_v39  ;;  %v3567_v8 = vmul.f32 %v3561_v6, %v5671_v26  ;;  %4381 = vmatmul.mubr.msk.f32.vlgmr.msra.gmra.mrb[8].mxu1 %vm97_vm0, %v5474_v60 }
 0x451   :  { %3543 = vmatprep.mubr.f32.mxu1 %v4855_v2 }
 0x452   :  { %v4523_v58 = vpack.c.bf16 %v3566_v11, %v3564_v38  ;;  %v3662_v55 = vpop.permute.xlu1 %3661  ;;  %v3660_v3 = vpop.permute.xlu0 %3659  ;;  %v4521_v4 = vpack.c.bf16 %v3567_v8, %v3565_v51 }
 0x453   :  { %v3665_v27 = vsel %vm568_vm4, %v3658_v30, %v3662_v55  ;;  %v3667_v39 = vsel %vm568_vm4, %v3662_v55, %v3658_v30 }
 0x454   :  { %4382 = vmatmul.mubr.msk.f32.gmra.mrb[10].mxu1 %vm97_vm0, %v5487_v13  ;;  %4522 = vmatprep.subr.bf16.mxu1 %v4521_v4  ;;  %v3669_v13 = vmul.f32 %v3667_v39, %v5707_v59  ;;  %v3670_v10 = vmul.f32 %v3665_v27, %v5697_v40 }
 0x455   :  { %4524 = vmatpush1.bf16.msra.mxu1 %v4523_v58  ;;  %3638 = vmatprep.mubr.f32.mxu1 %v4855_v2 }
 0x456   :  { %v3856_v60 = vpop.permute.xlu1 %3855  ;;  %v3664_v26 = vpop.permute.xlu0 %3663 }
 0x457   :  { %v3666_v62 = vsel %vm568_vm4, %v3660_v3, %v3664_v26  ;;  %v3668_v33 = vsel %vm568_vm4, %v3664_v26, %v3660_v3 }
 0x458   :  { %v3671_v20 = vmul.f32 %v3668_v33, %v5707_v59  ;;  %v3672_v23 = vmul.f32 %v3666_v62, %v5697_v40  ;;  %4383 = vmatmul.mubr.msk.f32.vlgmr.msra.gmra.mrb[8].mxu1 %vm97_vm0, %v5496_v24 }
 0x459   :  { %3644 = vmatprep.mubr.f32.mxu1 %v4855_v2 }
 0x45a   :  { %v4527_v22 = vpack.c.bf16 %v3671_v20, %v3669_v13  ;;  %v3860_v17 = vpop.permute.xlu1 %3859  ;;  %v3858_v29 = vpop.permute.xlu0 %3857  ;;  %v4525_v31 = vpack.c.bf16 %v3672_v23, %v3670_v10 }
 0x45b   :  { %v3865_v49 = vsel %vm795_vm5, %v3860_v17, %v3856_v60  ;;  %v3863_v9 = vsel %vm795_vm5, %v3856_v60, %v3860_v17 }
 0x45c   :  { %4384 = vmatmul.mubr.msk.f32.gmra.mrb[10].mxu1 %vm97_vm0, %v5509_v35  ;;  %4526 = vmatprep.subr.bf16.mxu1 %v4525_v31  ;;  %v3868_v32 = vmul.f32 %v3865_v49, %v5737_v52 }
 0x45d   :  { %4528 = vmatpush1.bf16.msra.mxu1 %v4527_v22  ;;  %3743 = vmatprep.mubr.f32.mxu1 %v4855_v2 }
 0x45e   :  { %v3961_v40 = vpop.permute.xlu1 %3960  ;;  %v3862_v59 = vpop.permute.xlu0 %3861  ;;  %4530 = vmatprep.subr.bf16.mxu1 %v4529_v57 }
 0x45f   :  { %v3866_v24 = vsel %vm795_vm5, %v3862_v59, %v3858_v29  ;;  %v3864_v35 = vsel %vm795_vm5, %v3858_v29, %v3862_v59 }
 0x460   :  { %v3870_v16 = vmul.f32 %v3866_v24, %v5737_v52  ;;  %4385 = vmatmul.mubr.msk.f32.vlgmr.msra.gmra.mrb[8].mxu1 %vm97_vm0, %v5516_v37  ;;  %v3869_v45 = vmul.f32 %v3864_v35, %v5757_v41  ;;  %v3867_v37 = vmul.f32 %v3863_v9, %v5757_v41 }
 0x461   :  { %4532 = vmatpush1.bf16.msra.mxu1 %v4531_v34  ;;  %3749 = vmatprep.mubr.f32.mxu1 %v4855_v2 }
 0x462   :  { %v3965_v19 = vpop.permute.xlu1 %3964  ;;  %v3963_v57 = vpop.permute.xlu0 %3962  ;;  %v4533_v47 = vpack.c.bf16 %v3870_v16, %v3868_v32  ;;  %v4535_v34 = vpack.c.bf16 %v3869_v45, %v3867_v37 }
 0x463   :  { %v3970_v52 = vsel %vm915_vm6, %v3965_v19, %v3961_v40  ;;  %v3968_v41 = vsel %vm915_vm6, %v3961_v40, %v3965_v19 }
 0x464   :  { %4386 = vmatmul.mubr.msk.f32.gmra.mrb[10].mxu1 %vm97_vm0, %v5533_v48  ;;  %4534 = vmatprep.subr.bf16.mxu1 %v4533_v47  ;;  %v3973_v0 = vmul.f32 %v3970_v52, %v5764_v5 }
 0x465   :  { %3836 = vmatprep.mubr.f32.mxu1 %v4855_v2 }
 0x466   :  { %v4066_v18 = vpop.permute.xlu1 %4065  ;;  %v3967_v7 = vpop.permute.xlu0 %3966 }
 0x467   :  { %v3971_v44 = vsel %vm915_vm6, %v3967_v7, %v3963_v57  ;;  %v3969_v30 = vsel %vm915_vm6, %v3963_v57, %v3967_v7 }
 0x468   :  { %v3975_v48 = vmul.f32 %v3971_v44, %v5764_v5  ;;  %4387 = vmatmul.mubr.msk.f32.vlgmr.msra.gmra.mrb[8].mxu1 %vm97_vm0, %v5544_v43  ;;  %v3974_v38 = vmul.f32 %v3969_v30, %v5782_v15  ;;  %v3972_v5 = vmul.f32 %v3968_v41, %v5782_v15 }
 0x469   :  { %4536 = vmatpush1.bf16.msra.mxu1 %v4535_v34  ;;  %3842 = vmatprep.mubr.f32.mxu1 %v4855_v2 }
 0x46a   :  { %v4070_v21 = vpop.permute.xlu1 %4069  ;;  %v4068_v6 = vpop.permute.xlu0 %4067  ;;  %v4537_v54 = vpack.c.bf16 %v3975_v48, %v3973_v0  ;;  %v4539_v8 = vpack.c.bf16 %v3974_v38, %v3972_v5 }
 0x46b   :  { %v4075_v43 = vsel %vm1035_vm7, %v4070_v21, %v4066_v18  ;;  %v4073_v15 = vsel %vm1035_vm7, %v4066_v18, %v4070_v21 }
 0x46c   :  { %4388 = vmatmul.mubr.msk.f32.gmra.mrb[10].mxu1 %vm97_vm0, %v5555_v1  ;;  %4538 = vmatprep.subr.bf16.mxu1 %v4537_v54  ;;  %v4078_v55 = vmul.f32 %v4075_v43, %v5789_v63 }
 0x46d   :  { %3941 = vmatprep.mubr.f32.mxu1 %v4855_v2 }
 0x46e   :  { %v4171_v51 = vpop.permute.xlu1 %4170  ;;  %v4072_v11 = vpop.permute.xlu0 %4071 }
 0x46f   :  { %v4076_v58 = vsel %vm1035_vm7, %v4072_v11, %v4068_v6  ;;  %v4074_v3 = vsel %vm1035_vm7, %v4068_v6, %v4072_v11 }
 0x470   :  { %v4080_v1 = vmul.f32 %v4076_v58, %v5789_v63  ;;  %4389 = vmatmul.mubr.msk.f32.vlgmr.msra.gmra.mrb[8].mxu1 %vm97_vm0, %v5566_v28  ;;  %v4079_v60 = vmul.f32 %v4074_v3, %v5807_v42  ;;  %v4077_v63 = vmul.f32 %v4073_v15, %v5807_v42 }
 0x471   :  { %4540 = vmatpush1.bf16.msra.mxu1 %v4539_v8  ;;  %3947 = vmatprep.mubr.f32.mxu1 %v4855_v2 }
 0x472   :  { %v4175_v4 = vpop.permute.xlu1 %4174  ;;  %v4173_v27 = vpop.permute.xlu0 %4172  ;;  %v4541_v39 = vpack.c.bf16 %v4080_v1, %v4078_v55  ;;  %v4543_v62 = vpack.c.bf16 %v4079_v60, %v4077_v63 }
 0x473   :  { %v4180_v28 = vsel %vm1155_vm8, %v4175_v4, %v4171_v51  ;;  %v4178_v42 = vsel %vm1155_vm8, %v4171_v51, %v4175_v4 }
 0x474   :  { %4390 = vmatmul.mubr.msk.f32.gmra.mrb[10].mxu1 %vm97_vm0, %v5577_v36  ;;  %4542 = vmatprep.subr.bf16.mxu1 %v4541_v39  ;;  %v4183_v13 = vmul.f32 %v4180_v28, %v5814_v61  ;;  %v4182_v22 = vmul.f32 %v4178_v42, %v5829_v56 }
 0x475   :  { %4046 = vmatprep.mubr.f32.mxu1 %v4855_v2 }
 0x476   :  { %v4177_v26 = vpop.permute.xlu0 %4176 }
 0x477   :  { %v4181_v33 = vsel %vm1155_vm8, %v4177_v26, %v4173_v27  ;;  %v4179_v10 = vsel %vm1155_vm8, %v4173_v27, %v4177_v26 }
 0x478   :  { %v4185_v36 = vmul.f32 %v4181_v33, %v5814_v61  ;;  %4391 = vmatmul.mubr.msk.f32.vlgmr.msra.gmra.mrb[8].mxu1 %vm97_vm0, %v5588_v50  ;;  %v4184_v23 = vmul.f32 %v4179_v10, %v5829_v56 }
 0x479   :  { %4544 = vmatpush1.bf16.msra.mxu1 %v4543_v62  ;;  %4052 = vmatprep.mubr.f32.mxu1 %v4855_v2 }
 0x47a   :  { %v4545_v20 = vpack.c.bf16 %v4185_v36, %v4183_v13  ;;  %v4547_v61 = vpack.c.bf16 %v4184_v23, %v4182_v22 }
 0x47c   :  { %4392 = vmatmul.mubr.msk.f32.gmra.mrb[10].mxu1 %vm97_vm0, %v5602_v12  ;;  %4546 = vmatprep.subr.bf16.mxu1 %v4545_v20 }
 0x47d   :  { %4151 = vmatprep.mubr.f32.mxu1 %v4855_v2 }
 0x480   :  { %4393 = vmatmul.mubr.msk.f32.vlgmr.msra.gmra.mrb[8].mxu1 %vm97_vm0, %v5616_v14 }
 0x481   :  { %4548 = vmatpush1.bf16.msra.mxu1 %v4547_v61  ;;  %4157 = vmatprep.mubr.f32.mxu1 %v4855_v2 }
 0x484   :  { %4394 = vmatmul.mubr.msk.f32.gmra.mrb[10].mxu1 %vm97_vm0, %v5637_v46 }
 0x485   :  { %4256 = vmatprep.mubr.f32.mxu1 %v4855_v2 }
 0x488   :  { %4395 = vmatmul.mubr.msk.f32.vlgmr.msra.gmra.mrb[8].mxu1 %vm97_vm0, %v5647_v53 }
 0x489   :  { %4262 = vmatprep.mubr.f32.mxu1 %v4855_v2 }
 0x48c   :  { %4396 = vmatmul.mubr.msk.f32.gmra.mrb[10].mxu1 %vm97_vm0, %v6083_v25 }
 0x55b   :  { %v4258_v50 = vpop.f32.mrb[8].mxu1 }
 0x55c   :  { %4274 = vst [vmem:[#allocation10 + $0x20] sm:$0xff] %v4258_v50  ;;  %v4260_v12 = vpop.f32.mrb[9].mxu1 }
 0x55d   :  { %4275 = vst [vmem:[#allocation10 + $0x28] sm:$0xff] %v4260_v12 }
 0x55f   :  { %v4264_v14 = vpop.f32.mrb[10].mxu1 }
 0x560   :  { %4276 = vst [vmem:[#allocation10 + $0x30] sm:$0xff] %v4264_v14  ;;  %v4266_v46 = vpop.f32.mrb[11].mxu1 }
 0x561   :  { %4277 = vst [vmem:[#allocation10 + $0x38] sm:$0xff] %v4266_v46 }
 0x562   :  { %4828 = shalt.err (!%p4825_p8)
}
 0x563   :  { %s4829_s28 = scalar_lea.hbm %s6080_s6, 1024 }
 0x564   :  { %p4830_p9 = scmp.ne.s32.totalorder %s6080_s6, %s4829_s28  ;;  %p4833_p10 = scmp.lt.u32.totalorder %s4829_s28, %s6080_s6 }
 0x566   :  { %p4835_p11 = pnand %p4833_p10, %p4830_p9 }
 0x568   :  { %4838 = shalt.err (!%p4835_p11)
}
 0x569   :  { %4289 = dma.vmem_to_hbm [thread:$0]  %s4284_s4, 1024, %s6080_s6, [#allocation4], %s4851_s1, %s4851_s1, %s4852_s21  }
 0x56a   :  { %4845 = dma.done.wait [#allocation4], 1024  }
 0x56b   :  { %4846 = vsyncadd [#allocation4], 4294966272 }
 0x56c   :  { %4293 = vsyncpa [#allocation3], 1 }
 0x56d   :  { %4294 = vsyncpa [#allocation6], 1 }
 0x56e   :  { %4295 = vsyncpa [#allocation9], 1 }
 0x56f   :  { %4296 = vsyncpa [#allocation4], 1 }

</bundles_post_ra>
